<compile_context>
chip_gen: v7x
topology: tpu7x:2x2x1
jax: 0.10.0
libtpu: 0.0.40
codegen_flags: <defaults>
</compile_context>

<pallas_src>
import functools

import jax
import jax.numpy as jnp
from jax import lax
from jax.experimental import pallas as pl
from jax.experimental.pallas import tpu as pltpu

BN_EPS = 1e-5


def mlp_fused_kernel(x_ref, w_ref, gb_ref, out_ref, *, layers_per_step):
    """Runs `layers_per_step` layers (linear -> BN(train) -> relu) per grid step.

    Activations are carried across grid steps in out_ref (constant output
    index_map => block stays resident in VMEM, written back to HBM once).
    """
    step = pl.program_id(0)

    # Seed the carried activation from the input on the very first step only.
    @pl.when(step == 0)
    def _():
        out_ref[...] = x_ref[...]

    batch = out_ref.shape[0]
    inv_b = 1.0 / batch

    def layer_body(l, x):
        # (N, N) bf16 weight, already in (in, out) layout -> no in-kernel .T
        w = w_ref[l]
        y = jnp.dot(x.astype(jnp.bfloat16), w,
                    preferred_element_type=jnp.float32)          # (B, N) f32

        gb = gb_ref[l]                                           # (2, N) f32
        gamma = gb[0:1, :]                                       # (1, N)
        beta = gb[1:2, :]                                        # (1, N)

        # Fused BatchNorm1d (training): one reduction pass, one elementwise pass.
        mean = jnp.sum(y, axis=0, keepdims=True) * inv_b         # (1, N)
        mean_sq = jnp.sum(y * y, axis=0, keepdims=True) * inv_b  # (1, N)
        var = mean_sq - mean * mean                              # biased var
        scale = gamma * lax.rsqrt(var + BN_EPS)                  # EUP rsqrt
        shift = beta - mean * scale
        return jnp.maximum(y * scale + shift, 0.0)               # ReLU

    x = lax.fori_loop(0, layers_per_step, layer_body, out_ref[...], unroll=True)
    out_ref[...] = x
    # TODO(synk): per-layer std() logging / NaN early-break from the PyTorch
    # forward is host-side logging + data-dependent break; not reproduced here.


def prepare_params(weights, gammas, betas):
    """One-time HBM layout prep.

    weights: (L, N, N) f32 in PyTorch (out, in) layout.
    gammas/betas: (L, N) f32.
    Returns (L, N, N) bf16 weights in (in, out) layout and (L, 2, N) f32 gb.
    """
    weights_t = jnp.swapaxes(weights, 1, 2).astype(jnp.bfloat16)
    gb = jnp.stack([gammas, betas], axis=1)
    return weights_t, gb


def pick_layers_per_step(num_layers, n, bytes_per_weight=2,
                         weight_block_budget_bytes=8 << 20):
    """Largest divisor of num_layers whose weight block fits a conservative
    VMEM budget (double-buffered it stays well under v7x's 64 MiB too)."""
    per_layer = n * n * bytes_per_weight
    max_lps = max(1, weight_block_budget_bytes // per_layer)
    lps = 1
    for d in range(1, num_layers + 1):
        if num_layers % d == 0 and d <= max_lps:
            lps = d
    return lps


@functools.partial(jax.jit, static_argnames=("layers_per_step",))
def mlp_forward(x, weights_t, gb, *, layers_per_step):
    """x: (B, N) f32; weights_t: (L, N, N) bf16 (in,out); gb: (L, 2, N) f32."""
    L, N, _ = weights_t.shape
    B = x.shape[0]
    assert L % layers_per_step == 0
    num_steps = L // layers_per_step

    kernel = functools.partial(mlp_fused_kernel, layers_per_step=layers_per_step)

    return pl.pallas_call(
        kernel,
        out_shape=jax.ShapeDtypeStruct((B, N), x.dtype),
        grid_spec=pltpu.PrefetchScalarGridSpec(
            num_scalar_prefetch=0,
            grid=(num_steps,),
            in_specs=[
                pl.BlockSpec((B, N), lambda i: (0, 0)),                    # x (read once)
                pl.BlockSpec((layers_per_step, N, N), lambda i: (i, 0, 0)),  # W chunk
                pl.BlockSpec((layers_per_step, 2, N), lambda i: (i, 0, 0)),  # gamma/beta
            ],
            out_specs=pl.BlockSpec((B, N), lambda i: (0, 0)),              # carried output
        ),
        input_output_aliases={0: 0},  # x buffer reused as the output buffer
        compiler_params=pltpu.CompilerParams(
            dimension_semantics=("arbitrary",),
        ),
    )(x, weights_t, gb)


def reference_forward(x, weights_t, gb):
    """Pure-JAX reference with the same bf16 weight quantization (BN in f32)."""
    gammas = gb[:, 0, :]
    betas = gb[:, 1, :]
    for i in range(weights_t.shape[0]):
        y = jnp.dot(x.astype(jnp.bfloat16), weights_t[i],
                    preferred_element_type=jnp.float32)
        mean = jnp.mean(y, axis=0, keepdims=True)
        var = jnp.mean((y - mean) ** 2, axis=0, keepdims=True)
        y = gammas[i][None, :] * ((y - mean) * lax.rsqrt(var + BN_EPS)) \
            + betas[i][None, :]
        x = jnp.maximum(y, 0.0)
    return x


if __name__ == "__main__":
    # Small, module-consistent shapes (module default layers=100; small demo).
    B = 8        # batch
    N = 256      # neural_num (feature width)
    L = 8        # layers

    key = jax.random.PRNGKey(0)
    k_x, k_w = jax.random.split(key)

    # Input ~ N(0, 1), as in the original script.
    x = jax.random.normal(k_x, (B, N), dtype=jnp.float32)

    # kaiming_normal_ (fan_in, relu gain): std = sqrt(2 / fan_in); PyTorch
    # (out, in) layout; no bias.
    weights = jax.random.normal(k_w, (L, N, N), dtype=jnp.float32) * jnp.sqrt(2.0 / N)

    # BatchNorm1d default affine init: gamma = 1, beta = 0.
    gammas = jnp.ones((L, N), dtype=jnp.float32)
    betas = jnp.zeros((L, N), dtype=jnp.float32)

    weights_t, gb = prepare_params(weights, gammas, betas)
    lps = pick_layers_per_step(L, N)   # -> 8 here: whole MLP in one grid step

    out = mlp_forward(x, weights_t, gb, layers_per_step=lps)
    out = jax.block_until_ready(out)

    ref = reference_forward(x, weights_t, gb)
    assert out.shape == (B, N)
    # Tolerance reflects bf16 weight streaming (both paths use the same
    # quantized weights; BN stats and accumulation are f32 in both).
    assert bool(jnp.allclose(out, ref, atol=2e-2, rtol=2e-2)), "mismatch vs reference"

    print("KERNEL_OK")
</pallas_src>

<mosaic_0001>
module attributes {stable_mosaic.version = 11 : i64} {
  func.func @mlp_fused_kernel(%arg0: i32, %arg1: memref<8x256xf32, #tpu.memory_space<vmem>>, %arg2: memref<8x256x256xbf16, #tpu.memory_space<vmem>>, %arg3: memref<8x2x256xf32, #tpu.memory_space<vmem>>, %arg4: memref<8x256xf32, #tpu.memory_space<vmem>>) attributes {dimension_semantics = [#tpu.dimension_semantics<arbitrary>], iteration_bounds = array<i64: 1>, scalar_prefetch = 0 : i64, scratch_operands = 0 : i64, tpu.core_type = #tpu.core_type<tc>, window_params = [{pipeline_mode = #tpu.pipeline_mode<synchronous>, transform_indices = @transform_0, window_bounds = array<i64: 8, 256>}, {transform_indices = @transform_1, window_bounds = array<i64: 8, 256, 256>}, {transform_indices = @transform_2, window_bounds = array<i64: 8, 2, 256>}, {pipeline_mode = #tpu.pipeline_mode<synchronous>, transform_indices = @transform_3, window_bounds = array<i64: 8, 256>}]} {
    %c0_i32 = arith.constant 0 : i32
    %0 = arith.cmpi eq, %arg0, %c0_i32 : i32
    %1 = arith.extui %0 : i1 to i32
    %c0_i32_0 = arith.constant 0 : i32
    %2 = arith.cmpi ne, %1, %c0_i32_0 : i32
    scf.if %2 {
      %c0_92 = arith.constant 0 : index
      %c0_93 = arith.constant 0 : index
      %269 = vector.load %arg1[%c0_92, %c0_93] : memref<8x256xf32, #tpu.memory_space<vmem>>, vector<8x256xf32>
      %c0_94 = arith.constant 0 : index
      %c0_95 = arith.constant 0 : index
      %270 = vector.load %arg4[%c0_94, %c0_95] : memref<8x256xf32, #tpu.memory_space<vmem>>, vector<8x256xf32>
      tpu.vector_store %arg4[%c0_94, %c0_95], %269 {strides = array<i32>} : memref<8x256xf32, #tpu.memory_space<vmem>>, vector<8x256xf32>,
    } else {
    }
    %c0 = arith.constant 0 : index
    %c0_1 = arith.constant 0 : index
    %3 = vector.load %arg4[%c0, %c0_1] : memref<8x256xf32, #tpu.memory_space<vmem>>, vector<8x256xf32>
    %c0_i32_2 = arith.constant 0 : i32
    %4 = arith.index_cast %c0_i32_2 : i32 to index
    %c0_3 = arith.constant 0 : index
    %c0_4 = arith.constant 0 : index
    %5 = vector.load %arg2[%4, %c0_3, %c0_4] : memref<8x256x256xbf16, #tpu.memory_space<vmem>>, vector<1x256x256xbf16>
    %6 = vector.shape_cast %5 : vector<1x256x256xbf16> to vector<256x256xbf16>
    %7 = arith.truncf %3 : vector<8x256xf32> to vector<8x256xbf16>
    %cst = arith.constant dense<0.000000e+00> : vector<8x256xf32>
    %8 = tpu.matmul %7, %6, %cst {dimension_numbers = #tpu.dot_dimension_numbers<[1], [0], [0], [1], [0, 0, 1, 1], [], []>} : vector<8x256xbf16>, vector<256x256xbf16>, vector<8x256xf32> -> vector<8x256xf32>
    %9 = arith.index_cast %c0_i32_2 : i32 to index
    %c0_5 = arith.constant 0 : index
    %c0_6 = arith.constant 0 : index
    %10 = vector.load %arg3[%9, %c0_5, %c0_6] : memref<8x2x256xf32, #tpu.memory_space<vmem>>, vector<1x2x256xf32>
    %11 = vector.shape_cast %10 : vector<1x2x256xf32> to vector<2x256xf32>
    %12 = vector.extract_strided_slice %11 {offsets = [0, 0], sizes = [1, 256], strides = [1, 1]} : vector<2x256xf32> to vector<1x256xf32>
    %13 = vector.extract_strided_slice %11 {offsets = [1, 0], sizes = [1, 256], strides = [1, 1]} : vector<2x256xf32> to vector<1x256xf32>
    %cst_7 = arith.constant dense<0.000000e+00> : vector<256xf32>
    %14 = vector.multi_reduction <add>, %8, %cst_7 [0] : vector<8x256xf32> to vector<256xf32>
    %15 = vector.shape_cast %14 : vector<256xf32> to vector<1x256xf32>
    %cst_8 = arith.constant 1.250000e-01 : f32
    %16 = vector.broadcast %cst_8 : f32 to vector<1x256xf32>
    %17 = arith.mulf %15, %16 : vector<1x256xf32>
    %18 = arith.mulf %8, %8 : vector<8x256xf32>
    %cst_9 = arith.constant dense<0.000000e+00> : vector<256xf32>
    %19 = vector.multi_reduction <add>, %18, %cst_9 [0] : vector<8x256xf32> to vector<256xf32>
    %20 = vector.shape_cast %19 : vector<256xf32> to vector<1x256xf32>
    %cst_10 = arith.constant 1.250000e-01 : f32
    %21 = vector.broadcast %cst_10 : f32 to vector<1x256xf32>
    %22 = arith.mulf %20, %21 : vector<1x256xf32>
    %23 = arith.mulf %17, %17 : vector<1x256xf32>
    %24 = arith.subf %22, %23 : vector<1x256xf32>
    %cst_11 = arith.constant 9.99999974E-6 : f32
    %25 = vector.broadcast %cst_11 : f32 to vector<1x256xf32>
    %26 = arith.addf %24, %25 : vector<1x256xf32>
    %27 = math.rsqrt %26 : vector<1x256xf32>
    %28 = arith.mulf %12, %27 : vector<1x256xf32>
    %29 = arith.mulf %17, %28 : vector<1x256xf32>
    %30 = arith.subf %13, %29 : vector<1x256xf32>
    %31 = vector.broadcast %28 : vector<1x256xf32> to vector<8x256xf32>
    %32 = arith.mulf %8, %31 : vector<8x256xf32>
    %33 = vector.broadcast %30 : vector<1x256xf32> to vector<8x256xf32>
    %34 = arith.addf %32, %33 : vector<8x256xf32>
    %cst_12 = arith.constant 0.000000e+00 : f32
    %35 = vector.broadcast %cst_12 : f32 to vector<8x256xf32>
    %36 = arith.maximumf %34, %35 : vector<8x256xf32>
    %c1_i32 = arith.constant 1 : i32
    %37 = arith.index_cast %c1_i32 : i32 to index
    %c0_13 = arith.constant 0 : index
    %c0_14 = arith.constant 0 : index
    %38 = vector.load %arg2[%37, %c0_13, %c0_14] : memref<8x256x256xbf16, #tpu.memory_space<vmem>>, vector<1x256x256xbf16>
    %39 = vector.shape_cast %38 : vector<1x256x256xbf16> to vector<256x256xbf16>
    %40 = arith.truncf %36 : vector<8x256xf32> to vector<8x256xbf16>
    %cst_15 = arith.constant dense<0.000000e+00> : vector<8x256xf32>
    %41 = tpu.matmul %40, %39, %cst_15 {dimension_numbers = #tpu.dot_dimension_numbers<[1], [0], [0], [1], [0, 0, 1, 1], [], []>} : vector<8x256xbf16>, vector<256x256xbf16>, vector<8x256xf32> -> vector<8x256xf32>
    %42 = arith.index_cast %c1_i32 : i32 to index
    %c0_16 = arith.constant 0 : index
    %c0_17 = arith.constant 0 : index
    %43 = vector.load %arg3[%42, %c0_16, %c0_17] : memref<8x2x256xf32, #tpu.memory_space<vmem>>, vector<1x2x256xf32>
    %44 = vector.shape_cast %43 : vector<1x2x256xf32> to vector<2x256xf32>
    %45 = vector.extract_strided_slice %44 {offsets = [0, 0], sizes = [1, 256], strides = [1, 1]} : vector<2x256xf32> to vector<1x256xf32>
    %46 = vector.extract_strided_slice %44 {offsets = [1, 0], sizes = [1, 256], strides = [1, 1]} : vector<2x256xf32> to vector<1x256xf32>
    %cst_18 = arith.constant dense<0.000000e+00> : vector<256xf32>
    %47 = vector.multi_reduction <add>, %41, %cst_18 [0] : vector<8x256xf32> to vector<256xf32>
    %48 = vector.shape_cast %47 : vector<256xf32> to vector<1x256xf32>
    %cst_19 = arith.constant 1.250000e-01 : f32
    %49 = vector.broadcast %cst_19 : f32 to vector<1x256xf32>
    %50 = arith.mulf %48, %49 : vector<1x256xf32>
    %51 = arith.mulf %41, %41 : vector<8x256xf32>
    %cst_20 = arith.constant dense<0.000000e+00> : vector<256xf32>
    %52 = vector.multi_reduction <add>, %51, %cst_20 [0] : vector<8x256xf32> to vector<256xf32>
    %53 = vector.shape_cast %52 : vector<256xf32> to vector<1x256xf32>
    %cst_21 = arith.constant 1.250000e-01 : f32
    %54 = vector.broadcast %cst_21 : f32 to vector<1x256xf32>
    %55 = arith.mulf %53, %54 : vector<1x256xf32>
    %56 = arith.mulf %50, %50 : vector<1x256xf32>
    %57 = arith.subf %55, %56 : vector<1x256xf32>
    %cst_22 = arith.constant 9.99999974E-6 : f32
    %58 = vector.broadcast %cst_22 : f32 to vector<1x256xf32>
    %59 = arith.addf %57, %58 : vector<1x256xf32>
    %60 = math.rsqrt %59 : vector<1x256xf32>
    %61 = arith.mulf %45, %60 : vector<1x256xf32>
    %62 = arith.mulf %50, %61 : vector<1x256xf32>
    %63 = arith.subf %46, %62 : vector<1x256xf32>
    %64 = vector.broadcast %61 : vector<1x256xf32> to vector<8x256xf32>
    %65 = arith.mulf %41, %64 : vector<8x256xf32>
    %66 = vector.broadcast %63 : vector<1x256xf32> to vector<8x256xf32>
    %67 = arith.addf %65, %66 : vector<8x256xf32>
    %cst_23 = arith.constant 0.000000e+00 : f32
    %68 = vector.broadcast %cst_23 : f32 to vector<8x256xf32>
    %69 = arith.maximumf %67, %68 : vector<8x256xf32>
    %c2_i32 = arith.constant 2 : i32
    %70 = arith.index_cast %c2_i32 : i32 to index
    %c0_24 = arith.constant 0 : index
    %c0_25 = arith.constant 0 : index
    %71 = vector.load %arg2[%70, %c0_24, %c0_25] : memref<8x256x256xbf16, #tpu.memory_space<vmem>>, vector<1x256x256xbf16>
    %72 = vector.shape_cast %71 : vector<1x256x256xbf16> to vector<256x256xbf16>
    %73 = arith.truncf %69 : vector<8x256xf32> to vector<8x256xbf16>
    %cst_26 = arith.constant dense<0.000000e+00> : vector<8x256xf32>
    %74 = tpu.matmul %73, %72, %cst_26 {dimension_numbers = #tpu.dot_dimension_numbers<[1], [0], [0], [1], [0, 0, 1, 1], [], []>} : vector<8x256xbf16>, vector<256x256xbf16>, vector<8x256xf32> -> vector<8x256xf32>
    %75 = arith.index_cast %c2_i32 : i32 to index
    %c0_27 = arith.constant 0 : index
    %c0_28 = arith.constant 0 : index
    %76 = vector.load %arg3[%75, %c0_27, %c0_28] : memref<8x2x256xf32, #tpu.memory_space<vmem>>, vector<1x2x256xf32>
    %77 = vector.shape_cast %76 : vector<1x2x256xf32> to vector<2x256xf32>
    %78 = vector.extract_strided_slice %77 {offsets = [0, 0], sizes = [1, 256], strides = [1, 1]} : vector<2x256xf32> to vector<1x256xf32>
    %79 = vector.extract_strided_slice %77 {offsets = [1, 0], sizes = [1, 256], strides = [1, 1]} : vector<2x256xf32> to vector<1x256xf32>
    %cst_29 = arith.constant dense<0.000000e+00> : vector<256xf32>
    %80 = vector.multi_reduction <add>, %74, %cst_29 [0] : vector<8x256xf32> to vector<256xf32>
    %81 = vector.shape_cast %80 : vector<256xf32> to vector<1x256xf32>
    %cst_30 = arith.constant 1.250000e-01 : f32
    %82 = vector.broadcast %cst_30 : f32 to vector<1x256xf32>
    %83 = arith.mulf %81, %82 : vector<1x256xf32>
    %84 = arith.mulf %74, %74 : vector<8x256xf32>
    %cst_31 = arith.constant dense<0.000000e+00> : vector<256xf32>
    %85 = vector.multi_reduction <add>, %84, %cst_31 [0] : vector<8x256xf32> to vector<256xf32>
    %86 = vector.shape_cast %85 : vector<256xf32> to vector<1x256xf32>
    %cst_32 = arith.constant 1.250000e-01 : f32
    %87 = vector.broadcast %cst_32 : f32 to vector<1x256xf32>
    %88 = arith.mulf %86, %87 : vector<1x256xf32>
    %89 = arith.mulf %83, %83 : vector<1x256xf32>
    %90 = arith.subf %88, %89 : vector<1x256xf32>
    %cst_33 = arith.constant 9.99999974E-6 : f32
    %91 = vector.broadcast %cst_33 : f32 to vector<1x256xf32>
    %92 = arith.addf %90, %91 : vector<1x256xf32>
    %93 = math.rsqrt %92 : vector<1x256xf32>
    %94 = arith.mulf %78, %93 : vector<1x256xf32>
    %95 = arith.mulf %83, %94 : vector<1x256xf32>
    %96 = arith.subf %79, %95 : vector<1x256xf32>
    %97 = vector.broadcast %94 : vector<1x256xf32> to vector<8x256xf32>
    %98 = arith.mulf %74, %97 : vector<8x256xf32>
    %99 = vector.broadcast %96 : vector<1x256xf32> to vector<8x256xf32>
    %100 = arith.addf %98, %99 : vector<8x256xf32>
    %cst_34 = arith.constant 0.000000e+00 : f32
    %101 = vector.broadcast %cst_34 : f32 to vector<8x256xf32>
    %102 = arith.maximumf %100, %101 : vector<8x256xf32>
    %c3_i32 = arith.constant 3 : i32
    %103 = arith.index_cast %c3_i32 : i32 to index
    %c0_35 = arith.constant 0 : index
    %c0_36 = arith.constant 0 : index
    %104 = vector.load %arg2[%103, %c0_35, %c0_36] : memref<8x256x256xbf16, #tpu.memory_space<vmem>>, vector<1x256x256xbf16>
    %105 = vector.shape_cast %104 : vector<1x256x256xbf16> to vector<256x256xbf16>
    %106 = arith.truncf %102 : vector<8x256xf32> to vector<8x256xbf16>
    %cst_37 = arith.constant dense<0.000000e+00> : vector<8x256xf32>
    %107 = tpu.matmul %106, %105, %cst_37 {dimension_numbers = #tpu.dot_dimension_numbers<[1], [0], [0], [1], [0, 0, 1, 1], [], []>} : vector<8x256xbf16>, vector<256x256xbf16>, vector<8x256xf32> -> vector<8x256xf32>
    %108 = arith.index_cast %c3_i32 : i32 to index
    %c0_38 = arith.constant 0 : index
    %c0_39 = arith.constant 0 : index
    %109 = vector.load %arg3[%108, %c0_38, %c0_39] : memref<8x2x256xf32, #tpu.memory_space<vmem>>, vector<1x2x256xf32>
    %110 = vector.shape_cast %109 : vector<1x2x256xf32> to vector<2x256xf32>
    %111 = vector.extract_strided_slice %110 {offsets = [0, 0], sizes = [1, 256], strides = [1, 1]} : vector<2x256xf32> to vector<1x256xf32>
    %112 = vector.extract_strided_slice %110 {offsets = [1, 0], sizes = [1, 256], strides = [1, 1]} : vector<2x256xf32> to vector<1x256xf32>
    %cst_40 = arith.constant dense<0.000000e+00> : vector<256xf32>
    %113 = vector.multi_reduction <add>, %107, %cst_40 [0] : vector<8x256xf32> to vector<256xf32>
    %114 = vector.shape_cast %113 : vector<256xf32> to vector<1x256xf32>
    %cst_41 = arith.constant 1.250000e-01 : f32
    %115 = vector.broadcast %cst_41 : f32 to vector<1x256xf32>
    %116 = arith.mulf %114, %115 : vector<1x256xf32>
    %117 = arith.mulf %107, %107 : vector<8x256xf32>
    %cst_42 = arith.constant dense<0.000000e+00> : vector<256xf32>
    %118 = vector.multi_reduction <add>, %117, %cst_42 [0] : vector<8x256xf32> to vector<256xf32>
    %119 = vector.shape_cast %118 : vector<256xf32> to vector<1x256xf32>
    %cst_43 = arith.constant 1.250000e-01 : f32
    %120 = vector.broadcast %cst_43 : f32 to vector<1x256xf32>
    %121 = arith.mulf %119, %120 : vector<1x256xf32>
    %122 = arith.mulf %116, %116 : vector<1x256xf32>
    %123 = arith.subf %121, %122 : vector<1x256xf32>
    %cst_44 = arith.constant 9.99999974E-6 : f32
    %124 = vector.broadcast %cst_44 : f32 to vector<1x256xf32>
    %125 = arith.addf %123, %124 : vector<1x256xf32>
    %126 = math.rsqrt %125 : vector<1x256xf32>
    %127 = arith.mulf %111, %126 : vector<1x256xf32>
    %128 = arith.mulf %116, %127 : vector<1x256xf32>
    %129 = arith.subf %112, %128 : vector<1x256xf32>
    %130 = vector.broadcast %127 : vector<1x256xf32> to vector<8x256xf32>
    %131 = arith.mulf %107, %130 : vector<8x256xf32>
    %132 = vector.broadcast %129 : vector<1x256xf32> to vector<8x256xf32>
    %133 = arith.addf %131, %132 : vector<8x256xf32>
    %cst_45 = arith.constant 0.000000e+00 : f32
    %134 = vector.broadcast %cst_45 : f32 to vector<8x256xf32>
    %135 = arith.maximumf %133, %134 : vector<8x256xf32>
    %c4_i32 = arith.constant 4 : i32
    %136 = arith.index_cast %c4_i32 : i32 to index
    %c0_46 = arith.constant 0 : index
    %c0_47 = arith.constant 0 : index
    %137 = vector.load %arg2[%136, %c0_46, %c0_47] : memref<8x256x256xbf16, #tpu.memory_space<vmem>>, vector<1x256x256xbf16>
    %138 = vector.shape_cast %137 : vector<1x256x256xbf16> to vector<256x256xbf16>
    %139 = arith.truncf %135 : vector<8x256xf32> to vector<8x256xbf16>
    %cst_48 = arith.constant dense<0.000000e+00> : vector<8x256xf32>
    %140 = tpu.matmul %139, %138, %cst_48 {dimension_numbers = #tpu.dot_dimension_numbers<[1], [0], [0], [1], [0, 0, 1, 1], [], []>} : vector<8x256xbf16>, vector<256x256xbf16>, vector<8x256xf32> -> vector<8x256xf32>
    %141 = arith.index_cast %c4_i32 : i32 to index
    %c0_49 = arith.constant 0 : index
    %c0_50 = arith.constant 0 : index
    %142 = vector.load %arg3[%141, %c0_49, %c0_50] : memref<8x2x256xf32, #tpu.memory_space<vmem>>, vector<1x2x256xf32>
    %143 = vector.shape_cast %142 : vector<1x2x256xf32> to vector<2x256xf32>
    %144 = vector.extract_strided_slice %143 {offsets = [0, 0], sizes = [1, 256], strides = [1, 1]} : vector<2x256xf32> to vector<1x256xf32>
    %145 = vector.extract_strided_slice %143 {offsets = [1, 0], sizes = [1, 256], strides = [1, 1]} : vector<2x256xf32> to vector<1x256xf32>
    %cst_51 = arith.constant dense<0.000000e+00> : vector<256xf32>
    %146 = vector.multi_reduction <add>, %140, %cst_51 [0] : vector<8x256xf32> to vector<256xf32>
    %147 = vector.shape_cast %146 : vector<256xf32> to vector<1x256xf32>
    %cst_52 = arith.constant 1.250000e-01 : f32
    %148 = vector.broadcast %cst_52 : f32 to vector<1x256xf32>
    %149 = arith.mulf %147, %148 : vector<1x256xf32>
    %150 = arith.mulf %140, %140 : vector<8x256xf32>
    %cst_53 = arith.constant dense<0.000000e+00> : vector<256xf32>
    %151 = vector.multi_reduction <add>, %150, %cst_53 [0] : vector<8x256xf32> to vector<256xf32>
    %152 = vector.shape_cast %151 : vector<256xf32> to vector<1x256xf32>
    %cst_54 = arith.constant 1.250000e-01 : f32
    %153 = vector.broadcast %cst_54 : f32 to vector<1x256xf32>
    %154 = arith.mulf %152, %153 : vector<1x256xf32>
    %155 = arith.mulf %149, %149 : vector<1x256xf32>
    %156 = arith.subf %154, %155 : vector<1x256xf32>
    %cst_55 = arith.constant 9.99999974E-6 : f32
    %157 = vector.broadcast %cst_55 : f32 to vector<1x256xf32>
    %158 = arith.addf %156, %157 : vector<1x256xf32>
    %159 = math.rsqrt %158 : vector<1x256xf32>
    %160 = arith.mulf %144, %159 : vector<1x256xf32>
    %161 = arith.mulf %149, %160 : vector<1x256xf32>
    %162 = arith.subf %145, %161 : vector<1x256xf32>
    %163 = vector.broadcast %160 : vector<1x256xf32> to vector<8x256xf32>
    %164 = arith.mulf %140, %163 : vector<8x256xf32>
    %165 = vector.broadcast %162 : vector<1x256xf32> to vector<8x256xf32>
    %166 = arith.addf %164, %165 : vector<8x256xf32>
    %cst_56 = arith.constant 0.000000e+00 : f32
    %167 = vector.broadcast %cst_56 : f32 to vector<8x256xf32>
    %168 = arith.maximumf %166, %167 : vector<8x256xf32>
    %c5_i32 = arith.constant 5 : i32
    %169 = arith.index_cast %c5_i32 : i32 to index
    %c0_57 = arith.constant 0 : index
    %c0_58 = arith.constant 0 : index
    %170 = vector.load %arg2[%169, %c0_57, %c0_58] : memref<8x256x256xbf16, #tpu.memory_space<vmem>>, vector<1x256x256xbf16>
    %171 = vector.shape_cast %170 : vector<1x256x256xbf16> to vector<256x256xbf16>
    %172 = arith.truncf %168 : vector<8x256xf32> to vector<8x256xbf16>
    %cst_59 = arith.constant dense<0.000000e+00> : vector<8x256xf32>
    %173 = tpu.matmul %172, %171, %cst_59 {dimension_numbers = #tpu.dot_dimension_numbers<[1], [0], [0], [1], [0, 0, 1, 1], [], []>} : vector<8x256xbf16>, vector<256x256xbf16>, vector<8x256xf32> -> vector<8x256xf32>
    %174 = arith.index_cast %c5_i32 : i32 to index
    %c0_60 = arith.constant 0 : index
    %c0_61 = arith.constant 0 : index
    %175 = vector.load %arg3[%174, %c0_60, %c0_61] : memref<8x2x256xf32, #tpu.memory_space<vmem>>, vector<1x2x256xf32>
    %176 = vector.shape_cast %175 : vector<1x2x256xf32> to vector<2x256xf32>
    %177 = vector.extract_strided_slice %176 {offsets = [0, 0], sizes = [1, 256], strides = [1, 1]} : vector<2x256xf32> to vector<1x256xf32>
    %178 = vector.extract_strided_slice %176 {offsets = [1, 0], sizes = [1, 256], strides = [1, 1]} : vector<2x256xf32> to vector<1x256xf32>
    %cst_62 = arith.constant dense<0.000000e+00> : vector<256xf32>
    %179 = vector.multi_reduction <add>, %173, %cst_62 [0] : vector<8x256xf32> to vector<256xf32>
    %180 = vector.shape_cast %179 : vector<256xf32> to vector<1x256xf32>
    %cst_63 = arith.constant 1.250000e-01 : f32
    %181 = vector.broadcast %cst_63 : f32 to vector<1x256xf32>
    %182 = arith.mulf %180, %181 : vector<1x256xf32>
    %183 = arith.mulf %173, %173 : vector<8x256xf32>
    %cst_64 = arith.constant dense<0.000000e+00> : vector<256xf32>
    %184 = vector.multi_reduction <add>, %183, %cst_64 [0] : vector<8x256xf32> to vector<256xf32>
    %185 = vector.shape_cast %184 : vector<256xf32> to vector<1x256xf32>
    %cst_65 = arith.constant 1.250000e-01 : f32
    %186 = vector.broadcast %cst_65 : f32 to vector<1x256xf32>
    %187 = arith.mulf %185, %186 : vector<1x256xf32>
    %188 = arith.mulf %182, %182 : vector<1x256xf32>
    %189 = arith.subf %187, %188 : vector<1x256xf32>
    %cst_66 = arith.constant 9.99999974E-6 : f32
    %190 = vector.broadcast %cst_66 : f32 to vector<1x256xf32>
    %191 = arith.addf %189, %190 : vector<1x256xf32>
    %192 = math.rsqrt %191 : vector<1x256xf32>
    %193 = arith.mulf %177, %192 : vector<1x256xf32>
    %194 = arith.mulf %182, %193 : vector<1x256xf32>
    %195 = arith.subf %178, %194 : vector<1x256xf32>
    %196 = vector.broadcast %193 : vector<1x256xf32> to vector<8x256xf32>
    %197 = arith.mulf %173, %196 : vector<8x256xf32>
    %198 = vector.broadcast %195 : vector<1x256xf32> to vector<8x256xf32>
    %199 = arith.addf %197, %198 : vector<8x256xf32>
    %cst_67 = arith.constant 0.000000e+00 : f32
    %200 = vector.broadcast %cst_67 : f32 to vector<8x256xf32>
    %201 = arith.maximumf %199, %200 : vector<8x256xf32>
    %c6_i32 = arith.constant 6 : i32
    %202 = arith.index_cast %c6_i32 : i32 to index
    %c0_68 = arith.constant 0 : index
    %c0_69 = arith.constant 0 : index
    %203 = vector.load %arg2[%202, %c0_68, %c0_69] : memref<8x256x256xbf16, #tpu.memory_space<vmem>>, vector<1x256x256xbf16>
    %204 = vector.shape_cast %203 : vector<1x256x256xbf16> to vector<256x256xbf16>
    %205 = arith.truncf %201 : vector<8x256xf32> to vector<8x256xbf16>
    %cst_70 = arith.constant dense<0.000000e+00> : vector<8x256xf32>
    %206 = tpu.matmul %205, %204, %cst_70 {dimension_numbers = #tpu.dot_dimension_numbers<[1], [0], [0], [1], [0, 0, 1, 1], [], []>} : vector<8x256xbf16>, vector<256x256xbf16>, vector<8x256xf32> -> vector<8x256xf32>
    %207 = arith.index_cast %c6_i32 : i32 to index
    %c0_71 = arith.constant 0 : index
    %c0_72 = arith.constant 0 : index
    %208 = vector.load %arg3[%207, %c0_71, %c0_72] : memref<8x2x256xf32, #tpu.memory_space<vmem>>, vector<1x2x256xf32>
    %209 = vector.shape_cast %208 : vector<1x2x256xf32> to vector<2x256xf32>
    %210 = vector.extract_strided_slice %209 {offsets = [0, 0], sizes = [1, 256], strides = [1, 1]} : vector<2x256xf32> to vector<1x256xf32>
    %211 = vector.extract_strided_slice %209 {offsets = [1, 0], sizes = [1, 256], strides = [1, 1]} : vector<2x256xf32> to vector<1x256xf32>
    %cst_73 = arith.constant dense<0.000000e+00> : vector<256xf32>
    %212 = vector.multi_reduction <add>, %206, %cst_73 [0] : vector<8x256xf32> to vector<256xf32>
    %213 = vector.shape_cast %212 : vector<256xf32> to vector<1x256xf32>
    %cst_74 = arith.constant 1.250000e-01 : f32
    %214 = vector.broadcast %cst_74 : f32 to vector<1x256xf32>
    %215 = arith.mulf %213, %214 : vector<1x256xf32>
    %216 = arith.mulf %206, %206 : vector<8x256xf32>
    %cst_75 = arith.constant dense<0.000000e+00> : vector<256xf32>
    %217 = vector.multi_reduction <add>, %216, %cst_75 [0] : vector<8x256xf32> to vector<256xf32>
    %218 = vector.shape_cast %217 : vector<256xf32> to vector<1x256xf32>
    %cst_76 = arith.constant 1.250000e-01 : f32
    %219 = vector.broadcast %cst_76 : f32 to vector<1x256xf32>
    %220 = arith.mulf %218, %219 : vector<1x256xf32>
    %221 = arith.mulf %215, %215 : vector<1x256xf32>
    %222 = arith.subf %220, %221 : vector<1x256xf32>
    %cst_77 = arith.constant 9.99999974E-6 : f32
    %223 = vector.broadcast %cst_77 : f32 to vector<1x256xf32>
    %224 = arith.addf %222, %223 : vector<1x256xf32>
    %225 = math.rsqrt %224 : vector<1x256xf32>
    %226 = arith.mulf %210, %225 : vector<1x256xf32>
    %227 = arith.mulf %215, %226 : vector<1x256xf32>
    %228 = arith.subf %211, %227 : vector<1x256xf32>
    %229 = vector.broadcast %226 : vector<1x256xf32> to vector<8x256xf32>
    %230 = arith.mulf %206, %229 : vector<8x256xf32>
    %231 = vector.broadcast %228 : vector<1x256xf32> to vector<8x256xf32>
    %232 = arith.addf %230, %231 : vector<8x256xf32>
    %cst_78 = arith.constant 0.000000e+00 : f32
    %233 = vector.broadcast %cst_78 : f32 to vector<8x256xf32>
    %234 = arith.maximumf %232, %233 : vector<8x256xf32>
    %c7_i32 = arith.constant 7 : i32
    %235 = arith.index_cast %c7_i32 : i32 to index
    %c0_79 = arith.constant 0 : index
    %c0_80 = arith.constant 0 : index
    %236 = vector.load %arg2[%235, %c0_79, %c0_80] : memref<8x256x256xbf16, #tpu.memory_space<vmem>>, vector<1x256x256xbf16>
    %237 = vector.shape_cast %236 : vector<1x256x256xbf16> to vector<256x256xbf16>
    %238 = arith.truncf %234 : vector<8x256xf32> to vector<8x256xbf16>
    %cst_81 = arith.constant dense<0.000000e+00> : vector<8x256xf32>
    %239 = tpu.matmul %238, %237, %cst_81 {dimension_numbers = #tpu.dot_dimension_numbers<[1], [0], [0], [1], [0, 0, 1, 1], [], []>} : vector<8x256xbf16>, vector<256x256xbf16>, vector<8x256xf32> -> vector<8x256xf32>
    %240 = arith.index_cast %c7_i32 : i32 to index
    %c0_82 = arith.constant 0 : index
    %c0_83 = arith.constant 0 : index
    %241 = vector.load %arg3[%240, %c0_82, %c0_83] : memref<8x2x256xf32, #tpu.memory_space<vmem>>, vector<1x2x256xf32>
    %242 = vector.shape_cast %241 : vector<1x2x256xf32> to vector<2x256xf32>
    %243 = vector.extract_strided_slice %242 {offsets = [0, 0], sizes = [1, 256], strides = [1, 1]} : vector<2x256xf32> to vector<1x256xf32>
    %244 = vector.extract_strided_slice %242 {offsets = [1, 0], sizes = [1, 256], strides = [1, 1]} : vector<2x256xf32> to vector<1x256xf32>
    %cst_84 = arith.constant dense<0.000000e+00> : vector<256xf32>
    %245 = vector.multi_reduction <add>, %239, %cst_84 [0] : vector<8x256xf32> to vector<256xf32>
    %246 = vector.shape_cast %245 : vector<256xf32> to vector<1x256xf32>
    %cst_85 = arith.constant 1.250000e-01 : f32
    %247 = vector.broadcast %cst_85 : f32 to vector<1x256xf32>
    %248 = arith.mulf %246, %247 : vector<1x256xf32>
    %249 = arith.mulf %239, %239 : vector<8x256xf32>
    %cst_86 = arith.constant dense<0.000000e+00> : vector<256xf32>
    %250 = vector.multi_reduction <add>, %249, %cst_86 [0] : vector<8x256xf32> to vector<256xf32>
    %251 = vector.shape_cast %250 : vector<256xf32> to vector<1x256xf32>
    %cst_87 = arith.constant 1.250000e-01 : f32
    %252 = vector.broadcast %cst_87 : f32 to vector<1x256xf32>
    %253 = arith.mulf %251, %252 : vector<1x256xf32>
    %254 = arith.mulf %248, %248 : vector<1x256xf32>
    %255 = arith.subf %253, %254 : vector<1x256xf32>
    %cst_88 = arith.constant 9.99999974E-6 : f32
    %256 = vector.broadcast %cst_88 : f32 to vector<1x256xf32>
    %257 = arith.addf %255, %256 : vector<1x256xf32>
    %258 = math.rsqrt %257 : vector<1x256xf32>
    %259 = arith.mulf %243, %258 : vector<1x256xf32>
    %260 = arith.mulf %248, %259 : vector<1x256xf32>
    %261 = arith.subf %244, %260 : vector<1x256xf32>
    %262 = vector.broadcast %259 : vector<1x256xf32> to vector<8x256xf32>
    %263 = arith.mulf %239, %262 : vector<8x256xf32>
    %264 = vector.broadcast %261 : vector<1x256xf32> to vector<8x256xf32>
    %265 = arith.addf %263, %264 : vector<8x256xf32>
    %cst_89 = arith.constant 0.000000e+00 : f32
    %266 = vector.broadcast %cst_89 : f32 to vector<8x256xf32>
    %267 = arith.maximumf %265, %266 : vector<8x256xf32>
    %c8_i32 = arith.constant 8 : i32
    %c0_90 = arith.constant 0 : index
    %c0_91 = arith.constant 0 : index
    %268 = vector.load %arg4[%c0_90, %c0_91] : memref<8x256xf32, #tpu.memory_space<vmem>>, vector<8x256xf32>
    tpu.vector_store %arg4[%c0_90, %c0_91], %267 {strides = array<i32>} : memref<8x256xf32, #tpu.memory_space<vmem>>, vector<8x256xf32>,
    return
  }
  func.func @transform_0(%arg0: i32) -> (i32, i32) {
    %c0_i32 = arith.constant 0 : i32
    %c0_i32_0 = arith.constant 0 : i32
    %c0_i32_1 = arith.constant 0 : i32
    return %c0_i32, %c0_i32_0 : i32, i32
  }
  func.func @transform_1(%arg0: i32) -> (i32, i32, i32) {
    %c0_i32 = arith.constant 0 : i32
    %c0_i32_0 = arith.constant 0 : i32
    %c0_i32_1 = arith.constant 0 : i32
    return %arg0, %c0_i32, %c0_i32_0 : i32, i32, i32
  }
  func.func @transform_2(%arg0: i32) -> (i32, i32, i32) {
    %c0_i32 = arith.constant 0 : i32
    %c0_i32_0 = arith.constant 0 : i32
    %c0_i32_1 = arith.constant 0 : i32
    return %arg0, %c0_i32, %c0_i32_0 : i32, i32, i32
  }
  func.func @transform_3(%arg0: i32) -> (i32, i32) {
    %c0_i32 = arith.constant 0 : i32
    %c0_i32_0 = arith.constant 0 : i32
    %c0_i32_1 = arith.constant 0 : i32
    return %c0_i32, %c0_i32_0 : i32, i32
  }
}

</mosaic_0001>

<bundles_post_ra>
// kernel: mlp_forward.1
= control target key start
LH: loop header
LB: loop body
LE: loop exit
PB: predicated region body
PF: predicated region fallthrough
CT: control target
= control target key end

     0   :  { %8 = vsyncpa [#allocation3], 0  ;;  %s3790_s0 = inlined_call_operand.hbm [shape: f32[8,256], index: 0, kind: input, shape index: {}, may-alias: {0,3}]   ;;  %s3791_s1 = inlined_call_operand.hbm [shape: bf16[8,256,256], index: 1, kind: input, shape index: {}]   ;;  %s3792_s2 = inlined_call_operand.vmem [shape: f32[8,2,256], index: 2, kind: input, shape index: {}]   ;;  %s3793_s3 = inlined_call_operand.hbm [shape: f32[8,256], index: 3, kind: output, shape index: {}, may-alias: {0,3}]  }
   0x1   :  { %9 = vsyncpa [#allocation6], 0 }
   0x2   :  { %10 = vsyncpa [#allocation4], 0  ;;  %s3600_s12 = smov [#allocation2]   ;;  %s3601_s14 = smov [#allocation5]  }
   0x3   :  { %s17_s13 = sshll.u32 %s3600_s12, 4  ;;  %s26_s15 = sshll.u32 %s3601_s14, 4  ;;  %s18_s13 = int_to_ptr.vmem [resolvable:$true] %s17_s13  ;;  %s3626_s15 = int_to_ptr.vmem [resolvable:$true] %s26_s15 }
   0x4   :  { %s3528_s18 = scalar_lea.hbm %s3790_s0, 256 }
   0x5   :  { %p3529_p0 = scmp.ne.s32.totalorder %s3790_s0, %s3528_s18  ;;  %p3532_p1 = scmp.lt.u32.totalorder %s3528_s18, %s3790_s0 }
   0x7   :  { %p3534_p2 = pnand %p3532_p1, %p3529_p0 }
   0x9   :  { %3537 = shalt.err (!%p3534_p2)
}
   0xa   :  { %s3538_s23 = scalar_lea.vmem %s18_s13, 256  ;;  %p3543_p4 = scmp.lt.s32.totalorder %s18_s13, %s18_s13 }
   0xb   :  { %p3539_p3 = scmp.ne.s32.totalorder %s18_s13, %s3538_s23  ;;  %p3544_p5 = scmp.lt.s32.totalorder %s3538_s23, %s3538_s23 }
   0xd   :  { %p3545_p6 = por %p3544_p5, %p3543_p4 }
   0xf   :  { %p3546_p7 = pnand %p3545_p6, %p3539_p3 }
  0x11   :  { %3549 = shalt.err (!%p3546_p7)
}
  0x12   :  { %20 = dma.hbm_to_vmem [thread:$0]  %s3790_s0, 256, %s18_s13, [#allocation3]  }
  0x13   :  { %s3550_s28 = scalar_lea.hbm %s3791_s1, 32768 }
  0x14   :  { %p3551_p8 = scmp.ne.s32.totalorder %s3791_s1, %s3550_s28  ;;  %p3554_p9 = scmp.lt.u32.totalorder %s3550_s28, %s3791_s1 }
  0x16   :  { %p3556_p10 = pnand %p3554_p9, %p3551_p8 }
  0x18   :  { %3559 = shalt.err (!%p3556_p10)
}
  0x19   :  { %s3560_s6 = scalar_lea.vmem %s3626_s15, 32768  ;;  %p3565_p12 = scmp.lt.s32.totalorder %s3626_s15, %s3626_s15 }
  0x1a   :  { %p3561_p11 = scmp.ne.s32.totalorder %s3626_s15, %s3560_s6  ;;  %p3566_p13 = scmp.lt.s32.totalorder %s3560_s6, %s3560_s6 }
  0x1c   :  { %p3567_p0 = por %p3566_p13, %p3565_p12 }
  0x1e   :  { %p3568_p1 = pnand %p3567_p0, %p3561_p11 }
  0x20   :  { %3571 = shalt.err (!%p3568_p1)
}
  0x21   :  { %s3602_s0 = smov 128   ;;  %s3603_s7 = smov 8  }
  0x22   :  { %32 = dma.hbm_to_vmem [thread:$0]  %s3791_s1, 32768, %s3626_s15, [#allocation6], %s3602_s0, %s3602_s0, %s3603_s7  }
  0x23   :  { %3594 = dma.done.wait [#allocation3], 256  }
  0x24   :  { %3595 = vsyncadd [#allocation3], 4294967040 }
  0x25   :  { %3596 = dma.done.wait [#allocation6], 32768  }
  0x26   :  { %3597 = vsyncadd [#allocation6], 4294934528  ;;  %v3112_v0 = vld [vmem:[#allocation5 + $0x4] ss:$8 sps:$4 sm:$0xff]   ;;  %v3114_v1 = vld [vmem:[#allocation5] ss:$8 sps:$4 sm:$0xff]  }
  0x27   :  { %245 = vmatprep.subr.bf16.mxu0 %v3112_v0  ;;  %v3115_v2 = vld [vmem:[#allocation5 + $0x14] ss:$8 sps:$4 sm:$0xff]   ;;  %v3117_v3 = vld [vmem:[#allocation5 + $0x10] ss:$8 sps:$4 sm:$0xff]   ;;  %v3118_v4 = vld [vmem:[#allocation5 + $0x24] ss:$8 sps:$4 sm:$0xff]  }
  0x28   :  { %246 = vmatpush1.bf16.msra.mxu0 %v3114_v1  ;;  %v3120_v5 = vld [vmem:[#allocation5 + $0x20] ss:$8 sps:$4 sm:$0xff]   ;;  %v3121_v6 = vld [vmem:[#allocation5 + $0x34] ss:$8 sps:$4 sm:$0xff]   ;;  %v3123_v7 = vld [vmem:[#allocation5 + $0x30] ss:$8 sps:$4 sm:$0xff]  }
  0x29   :  { %247 = vmatprep.subr.bf16.mxu0 %v3115_v2  ;;  %v3124_v8 = vld [vmem:[#allocation5 + $0x44] ss:$8 sps:$4 sm:$0xff]   ;;  %v3126_v9 = vld [vmem:[#allocation5 + $0x40] ss:$8 sps:$4 sm:$0xff]   ;;  %v3127_v10 = vld [vmem:[#allocation5 + $0x54] ss:$8 sps:$4 sm:$0xff]  }
  0x2a   :  { %v3129_v11 = vld [vmem:[#allocation5 + $0x50] ss:$8 sps:$4 sm:$0xff]   ;;  %v3130_v12 = vld [vmem:[#allocation5 + $0x64] ss:$8 sps:$4 sm:$0xff]   ;;  %v3132_v13 = vld [vmem:[#allocation5 + $0x60] ss:$8 sps:$4 sm:$0xff]  }
  0x2b   :  { %v46_v14 = vld [vmem:[#allocation2 + $0x8] sm:$0xff]  ;;  %v3160_v17 = vld [vmem:[#allocation5 + $0x104] ss:$8 sps:$4 sm:$0xff]   ;;  %v3162_v18 = vld [vmem:[#allocation5 + $0x100] ss:$8 sps:$4 sm:$0xff]  }
  0x2c   :  { %248 = vmatpush1.bf16.msra.mxu0 %v3117_v3  ;;  %v3133_v15 = vld [vmem:[#allocation5 + $0x74] ss:$8 sps:$4 sm:$0xff]   ;;  %v84_v16 = vpack.c.bf16 %v46_v14, %v46_v14  ;;  %v3135_v19 = vld [vmem:[#allocation5 + $0x70] ss:$8 sps:$4 sm:$0xff]   ;;  %591 = vmatprep.subr.bf16.mxu1 %v3160_v17  ;;  %v3136_v20 = vld [vmem:[#allocation5 + $0x84] ss:$8 sps:$4 sm:$0xff]  }
  0x2d   :  { %249 = vmatprep.subr.bf16.mxu0 %v3118_v4  ;;  %592 = vmatpush1.bf16.msra.mxu1 %v3162_v18  ;;  %v3138_v21 = vld [vmem:[#allocation5 + $0x80] ss:$8 sps:$4 sm:$0xff]   ;;  %v3139_v22 = vld [vmem:[#allocation5 + $0x94] ss:$8 sps:$4 sm:$0xff]   ;;  %v3141_v23 = vld [vmem:[#allocation5 + $0x90] ss:$8 sps:$4 sm:$0xff]  }
  0x2e   :  { %277 = vmatprep.mubr.bf16.mxu0 %v84_v16  ;;  %v3142_v24 = vld [vmem:[#allocation5 + $0xa4] ss:$8 sps:$4 sm:$0xff]   ;;  %v3144_v25 = vld [vmem:[#allocation5 + $0xa0] ss:$8 sps:$4 sm:$0xff]   ;;  %v3145_v26 = vld [vmem:[#allocation5 + $0xb4] ss:$8 sps:$4 sm:$0xff]  }
  0x2f   :  { %v3147_v27 = vld [vmem:[#allocation5 + $0xb0] ss:$8 sps:$4 sm:$0xff]   ;;  %v3148_v28 = vld [vmem:[#allocation5 + $0xc4] ss:$8 sps:$4 sm:$0xff]   ;;  %v3150_v29 = vld [vmem:[#allocation5 + $0xc0] ss:$8 sps:$4 sm:$0xff]  }
  0x30   :  { %250 = vmatpush1.bf16.msra.mxu0 %v3120_v5  ;;  %v3151_v30 = vld [vmem:[#allocation5 + $0xd4] ss:$8 sps:$4 sm:$0xff]   ;;  %v3153_v31 = vld [vmem:[#allocation5 + $0xd0] ss:$8 sps:$4 sm:$0xff]   ;;  %v3154_v32 = vld [vmem:[#allocation5 + $0xe4] ss:$8 sps:$4 sm:$0xff]  }
  0x31   :  { %251 = vmatprep.subr.bf16.mxu0 %v3121_v6  ;;  %v3156_v33 = vld [vmem:[#allocation5 + $0xe0] ss:$8 sps:$4 sm:$0xff]   ;;  %v3157_v34 = vld [vmem:[#allocation5 + $0xf4] ss:$8 sps:$4 sm:$0xff]   ;;  %v3159_v35 = vld [vmem:[#allocation5 + $0xf0] ss:$8 sps:$4 sm:$0xff]  }
  0x32   :  { %v45_v36 = vld [vmem:[#allocation2] sm:$0xff]  ;;  %v3166_v40 = vld [vmem:[#allocation5 + $0x124] ss:$8 sps:$4 sm:$0xff]   ;;  %v3168_v41 = vld [vmem:[#allocation5 + $0x120] ss:$8 sps:$4 sm:$0xff]  }
  0x33   :  { %v83_v37 = vpack.c.bf16 %v45_v36, %v45_v36  ;;  %v3163_v38 = vld [vmem:[#allocation5 + $0x114] ss:$8 sps:$4 sm:$0xff]   ;;  %v3165_v39 = vld [vmem:[#allocation5 + $0x110] ss:$8 sps:$4 sm:$0xff]   ;;  %v3172_v44 = vld [vmem:[#allocation5 + $0x144] ss:$8 sps:$4 sm:$0xff]  }
  0x34   :  { %252 = vmatpush1.bf16.msra.mxu0 %v3123_v7  ;;  %593 = vmatprep.subr.bf16.mxu1 %v3163_v38  ;;  %v3169_v42 = vld [vmem:[#allocation5 + $0x134] ss:$8 sps:$4 sm:$0xff]   ;;  %v3171_v43 = vld [vmem:[#allocation5 + $0x130] ss:$8 sps:$4 sm:$0xff]   ;;  %v3174_v45 = vld [vmem:[#allocation5 + $0x140] ss:$8 sps:$4 sm:$0xff]  }
  0x35   :  { %253 = vmatprep.subr.bf16.mxu0 %v3124_v8  ;;  %594 = vmatpush1.bf16.msra.mxu1 %v3165_v39  ;;  %v3175_v46 = vld [vmem:[#allocation5 + $0x154] ss:$8 sps:$4 sm:$0xff]   ;;  %v3177_v47 = vld [vmem:[#allocation5 + $0x150] ss:$8 sps:$4 sm:$0xff]   ;;  %v3178_v48 = vld [vmem:[#allocation5 + $0x164] ss:$8 sps:$4 sm:$0xff]  }
  0x36   :  { %595 = vmatprep.subr.bf16.mxu1 %v3166_v40  ;;  %v3180_v49 = vld [vmem:[#allocation5 + $0x160] ss:$8 sps:$4 sm:$0xff]   ;;  %v3181_v50 = vld [vmem:[#allocation5 + $0x174] ss:$8 sps:$4 sm:$0xff]   ;;  %v3183_v51 = vld [vmem:[#allocation5 + $0x170] ss:$8 sps:$4 sm:$0xff]  }
  0x37   :  { %v3184_v52 = vld [vmem:[#allocation5 + $0x184] ss:$8 sps:$4 sm:$0xff]   ;;  %v3186_v53 = vld [vmem:[#allocation5 + $0x180] ss:$8 sps:$4 sm:$0xff]   ;;  %v3187_v54 = vld [vmem:[#allocation5 + $0x194] ss:$8 sps:$4 sm:$0xff]  }
  0x38   :  { %254 = vmatpush1.bf16.msra.mxu0 %v3126_v9  ;;  %v3189_v55 = vld [vmem:[#allocation5 + $0x190] ss:$8 sps:$4 sm:$0xff]   ;;  %v3190_v56 = vld [vmem:[#allocation5 + $0x1a4] ss:$8 sps:$4 sm:$0xff]   ;;  %v3192_v57 = vld [vmem:[#allocation5 + $0x1a0] ss:$8 sps:$4 sm:$0xff]  }
  0x39   :  { %255 = vmatprep.subr.bf16.mxu0 %v3127_v10  ;;  %596 = vmatpush1.bf16.msra.mxu1 %v3168_v41  ;;  %v3193_v58 = vld [vmem:[#allocation5 + $0x1b4] ss:$8 sps:$4 sm:$0xff]   ;;  %v3195_v59 = vld [vmem:[#allocation5 + $0x1b0] ss:$8 sps:$4 sm:$0xff]   ;;  %v3196_v60 = vld [vmem:[#allocation5 + $0x1c4] ss:$8 sps:$4 sm:$0xff]  }
  0x3a   :  { %597 = vmatprep.subr.bf16.mxu1 %v3169_v42  ;;  %v3198_v61 = vld [vmem:[#allocation5 + $0x1c0] ss:$8 sps:$4 sm:$0xff]   ;;  %v3199_v62 = vld [vmem:[#allocation5 + $0x1d4] ss:$8 sps:$4 sm:$0xff]   ;;  %v3201_v63 = vld [vmem:[#allocation5 + $0x1d0] ss:$8 sps:$4 sm:$0xff]  }
  0x3b   :  { %v3202_v0 = vld [vmem:[#allocation5 + $0x1e4] ss:$8 sps:$4 sm:$0xff]   ;;  %v3204_v1 = vld [vmem:[#allocation5 + $0x1e0] ss:$8 sps:$4 sm:$0xff]   ;;  %v3205_v2 = vld [vmem:[#allocation5 + $0x1f4] ss:$8 sps:$4 sm:$0xff]  }
  0x3c   :  { %256 = vmatpush1.bf16.msra.mxu0 %v3129_v11  ;;  %v3207_v3 = vld [vmem:[#allocation5 + $0x1f0] ss:$8 sps:$4 sm:$0xff]   ;;  %v3208_v4 = vld [vmem:[#allocation5 + $0x200] ss:$8 sps:$4 sm:$0xff]   ;;  %v3210_v5 = vld [vmem:[#allocation5 + $0x204] ss:$8 sps:$4 sm:$0xff]  }
  0x3d   :  { %257 = vmatprep.subr.bf16.mxu0 %v3130_v12  ;;  %598 = vmatpush1.bf16.msra.mxu1 %v3171_v43 }
  0x3e   :  { %599 = vmatprep.subr.bf16.mxu1 %v3172_v44 }
  0x40   :  { %258 = vmatpush1.bf16.msra.mxu0 %v3132_v13 }
  0x41   :  { %259 = vmatprep.subr.bf16.mxu0 %v3133_v15  ;;  %600 = vmatpush1.bf16.msra.mxu1 %v3174_v45 }
  0x42   :  { %601 = vmatprep.subr.bf16.mxu1 %v3175_v46  ;;  %v3604_v46 = vmov 1983009808  }
  0x44   :  { %260 = vmatpush1.bf16.msra.mxu0 %v3135_v19 }
  0x45   :  { %261 = vmatprep.subr.bf16.mxu0 %v3136_v20  ;;  %602 = vmatpush1.bf16.msra.mxu1 %v3177_v47  ;;  %v329_v47 = vunpack.c.l.s4 %v3604_v46  ;;  %v3252_v46 = vld [vmem:[#allocation5 + $0x2e4] ss:$8 sps:$4 sm:$0xff]  }
  0x46   :  { %603 = vmatprep.subr.bf16.mxu1 %v3178_v48  ;;  %v331_v48 = vlaneseq }
  0x48   :  { %262 = vmatpush1.bf16.msra.mxu0 %v3138_v21 }
  0x49   :  { %263 = vmatprep.subr.bf16.mxu0 %v3139_v22  ;;  %604 = vmatpush1.bf16.msra.mxu1 %v3180_v49  ;;  %v330_v49 = vunpack.c.0.s8 %v329_v47  ;;  %v3250_v47 = vld [vmem:[#allocation5 + $0x2e0] ss:$8 sps:$4 sm:$0xff]  }
  0x4a   :  { %605 = vmatprep.subr.bf16.mxu1 %v3181_v50  ;;  %v332_v50 = vshrl.u32 %v331_v48, 7  ;;  %v3255_v48 = vld [vmem:[#allocation5 + $0x2f4] ss:$8 sps:$4 sm:$0xff]  }
  0x4c   :  { %264 = vmatpush1.bf16.msra.mxu0 %v3141_v23 }
  0x4d   :  { %265 = vmatprep.subr.bf16.mxu0 %v3142_v24  ;;  %606 = vmatpush1.bf16.msra.mxu1 %v3183_v51 }
  0x4e   :  { %607 = vmatprep.subr.bf16.mxu1 %v3184_v52  ;;  %v3663_v52 = vsub.s32 %v330_v49, %v332_v50  ;;  %v3253_v49 = vld [vmem:[#allocation5 + $0x2f0] ss:$8 sps:$4 sm:$0xff]  }
  0x50   :  { %266 = vmatpush1.bf16.msra.mxu0 %v3144_v25 }
  0x51   :  { %267 = vmatprep.subr.bf16.mxu0 %v3145_v26  ;;  %608 = vmatpush1.bf16.msra.mxu1 %v3186_v53 }
  0x52   :  { %609 = vmatprep.subr.bf16.mxu1 %v3187_v54 }
  0x54   :  { %268 = vmatpush1.bf16.msra.mxu0 %v3147_v27 }
  0x55   :  { %269 = vmatprep.subr.bf16.mxu0 %v3148_v28  ;;  %610 = vmatpush1.bf16.msra.mxu1 %v3189_v55  ;;  %v286_v55 = vld [vmem:[%s3792_s2] sm:$0xf] }
  0x56   :  { %611 = vmatprep.subr.bf16.mxu1 %v3190_v56 }
  0x58   :  { %270 = vmatpush1.bf16.msra.mxu0 %v3150_v29 }
  0x59   :  { %271 = vmatprep.subr.bf16.mxu0 %v3151_v30  ;;  %612 = vmatpush1.bf16.msra.mxu1 %v3192_v57  ;;  %v3669_v57 = vsub.s32 0, %v332_v50 }
  0x5a   :  { %613 = vmatprep.subr.bf16.mxu1 %v3193_v58  ;;  %v3671_v58 = vsub.s32 2, %v332_v50 }
  0x5c   :  { %272 = vmatpush1.bf16.msra.mxu0 %v3153_v31 }
  0x5d   :  { %273 = vmatprep.subr.bf16.mxu0 %v3154_v32  ;;  %614 = vmatpush1.bf16.msra.mxu1 %v3195_v59 }
  0x5e   :  { %615 = vmatprep.subr.bf16.mxu1 %v3196_v60 }
  0x60   :  { %274 = vmatpush1.bf16.msra.mxu0 %v3156_v33 }
  0x61   :  { %275 = vmatprep.subr.bf16.mxu0 %v3157_v34  ;;  %616 = vmatpush1.bf16.msra.mxu1 %v3198_v61 }
  0x62   :  { %617 = vmatprep.subr.bf16.mxu1 %v3199_v62 }
  0x64   :  { %276 = vmatpush1.bf16.msra.mxu0 %v3159_v35 }
  0x65   :  { %618 = vmatpush1.bf16.msra.mxu1 %v3201_v63  ;;  %938 = vmatprep.subr.bf16.mxu0 %v3210_v5 }
  0x66   :  { %619 = vmatprep.subr.bf16.mxu1 %v3202_v0 }
  0x67   :  { %278 = vmatmul.mubr.bf16.vlgmr.msra.gmra.mrb[0].mxu0 %v83_v37 }
  0x68   :  { %939 = vmatpush1.bf16.msra.mxu0 %v3208_v4 }
  0x69   :  { %620 = vmatpush1.bf16.msra.mxu1 %v3204_v1 }
  0x6a   :  { %621 = vmatprep.subr.bf16.mxu1 %v3205_v2 }
  0x6d   :  { %622 = vmatpush1.bf16.msra.mxu1 %v3207_v3 }
 0x13a   :  { %v3657_v6 = vpop.f32.mrb[0].mxu0 }
 0x13b   :  { %v287_v7 = vrot.slane %v3657_v6, 4  ;;  %v301_v8 = vmul.f32 %v3657_v6, %v3657_v6  ;;  %v281_v9 = vpop.f32.mrb[1].mxu0 }
 0x13c   :  { %v293_v10 = vrot.slane %v281_v9, 4  ;;  %v302_v11 = vmul.f32 %v281_v9, %v281_v9  ;;  %v283_v12 = vpop.f32.mrb[2].mxu0 }
 0x13d   :  { %v288_v13 = vadd.f32 %v287_v7, %v3657_v6  ;;  %v303_v14 = vrot.slane %v301_v8, 4  ;;  %v284_v15 = vpop.f32.mrb[3].mxu0 }
 0x13e   :  { %v294_v16 = vadd.f32 %v293_v10, %v281_v9  ;;  %v309_v17 = vrot.slane %v302_v11, 4  ;;  %v3681_v10 = vsub.s32 3, %v332_v50 }
 0x13f   :  { %v289_v18 = vrot.slane %v288_v13, 2  ;;  %v304_v19 = vadd.f32 %v303_v14, %v301_v8  ;;  %v3679_v8 = vsub.s32 1, %v332_v50  ;;  %v3256_v50 = vld [vmem:[#allocation5 + $0x300] ss:$8 sps:$4 sm:$0xff]  }
 0x140   :  { %v295_v20 = vrot.slane %v294_v16, 2  ;;  %v310_v21 = vadd.f32 %v309_v17, %v302_v11 }
 0x141   :  { %v290_v22 = vadd.f32 %v289_v18, %v288_v13  ;;  %v305_v23 = vrot.slane %v304_v19, 2 }
 0x142   :  { %v296_v24 = vadd.f32 %v295_v20, %v294_v16  ;;  %v311_v25 = vrot.slane %v310_v21, 2  ;;  %v3213_v20 = vld [vmem:[#allocation5 + $0x214] ss:$8 sps:$4 sm:$0xff]  }
 0x143   :  { %v291_v26 = vrot.slane %v290_v22, 1  ;;  %v306_v27 = vadd.f32 %v305_v23, %v304_v19  ;;  %940 = vmatprep.subr.bf16.mxu0 %v3213_v20  ;;  %v3214_v23 = vld [vmem:[#allocation5 + $0x220] ss:$8 sps:$4 sm:$0xff]  }
 0x144   :  { %v297_v28 = vrot.slane %v296_v24, 1  ;;  %v312_v29 = vadd.f32 %v311_v25, %v310_v21  ;;  %v3211_v21 = vld [vmem:[#allocation5 + $0x210] ss:$8 sps:$4 sm:$0xff]  }
 0x145   :  { %v292_v30 = vadd.f32 %v291_v26, %v290_v22  ;;  %v307_v31 = vrot.slane %v306_v27, 1  ;;  %941 = vmatpush1.bf16.msra.mxu0 %v3211_v21  ;;  %v3216_v22 = vld [vmem:[#allocation5 + $0x224] ss:$8 sps:$4 sm:$0xff]   ;;  %v3217_v25 = vld [vmem:[#allocation5 + $0x230] ss:$8 sps:$4 sm:$0xff]  }
 0x146   :  { %v298_v32 = vadd.f32 %v297_v28, %v296_v24  ;;  %v313_v33 = vrot.slane %v312_v29, 1  ;;  %942 = vmatprep.subr.bf16.mxu0 %v3216_v22  ;;  %v3219_v24 = vld [vmem:[#allocation5 + $0x234] ss:$8 sps:$4 sm:$0xff]   ;;  %v3222_v26 = vld [vmem:[#allocation5 + $0x244] ss:$8 sps:$4 sm:$0xff]  }
 0x147   :  { %v299_v34 = vmul.f32 0.125, %v292_v30  ;;  %v308_v35 = vadd.f32 %v307_v31, %v306_v27  ;;  %v3220_v27 = vld [vmem:[#allocation5 + $0x240] ss:$8 sps:$4 sm:$0xff]   ;;  %v3225_v28 = vld [vmem:[#allocation5 + $0x254] ss:$8 sps:$4 sm:$0xff]  }
 0x148   :  { %v300_v36 = vmul.f32 0.125, %v298_v32  ;;  %v314_v37 = vadd.f32 %v313_v33, %v312_v29  ;;  %v3223_v29 = vld [vmem:[#allocation5 + $0x250] ss:$8 sps:$4 sm:$0xff]   ;;  %v3228_v30 = vld [vmem:[#allocation5 + $0x264] ss:$8 sps:$4 sm:$0xff]  }
 0x149   :  { %v315_v38 = vmul.f32 0.125, %v308_v35  ;;  %v317_v39 = vmul.f32 %v299_v34, %v299_v34  ;;  %943 = vmatpush1.bf16.msra.mxu0 %v3214_v23  ;;  %v3226_v31 = vld [vmem:[#allocation5 + $0x260] ss:$8 sps:$4 sm:$0xff]   ;;  %v3231_v32 = vld [vmem:[#allocation5 + $0x274] ss:$8 sps:$4 sm:$0xff]  }
 0x14a   :  { %v316_v40 = vmul.f32 0.125, %v314_v37  ;;  %v318_v41 = vmul.f32 %v300_v36, %v300_v36  ;;  %944 = vmatprep.subr.bf16.mxu0 %v3219_v24  ;;  %v3229_v33 = vld [vmem:[#allocation5 + $0x270] ss:$8 sps:$4 sm:$0xff]   ;;  %v3232_v35 = vld [vmem:[#allocation5 + $0x280] ss:$8 sps:$4 sm:$0xff]  }
 0x14b   :  { %v319_v42 = vsub.f32 %v315_v38, %v317_v39  ;;  %v3235_v37 = vld [vmem:[#allocation5 + $0x290] ss:$8 sps:$4 sm:$0xff]   ;;  %v3240_v38 = vld [vmem:[#allocation5 + $0x2a4] ss:$8 sps:$4 sm:$0xff]   ;;  %v3238_v39 = vld [vmem:[#allocation5 + $0x2a0] ss:$8 sps:$4 sm:$0xff]  }
 0x14c   :  { %v320_v43 = vsub.f32 %v316_v40, %v318_v41  ;;  %v3243_v40 = vld [vmem:[#allocation5 + $0x2b4] ss:$8 sps:$4 sm:$0xff]   ;;  %v3241_v41 = vld [vmem:[#allocation5 + $0x2b0] ss:$8 sps:$4 sm:$0xff]  }
 0x14d   :  { %v321_v44 = vadd.f32 1e-05, %v319_v42  ;;  %945 = vmatpush1.bf16.msra.mxu0 %v3217_v25  ;;  %v3244_v42 = vld [vmem:[#allocation5 + $0x2c0] ss:$8 sps:$4 sm:$0xff]  }
 0x14e   :  { %v322_v45 = vadd.f32 1e-05, %v320_v43  ;;  %946 = vmatprep.subr.bf16.mxu0 %v3222_v26  ;;  %v3246_v43 = vld [vmem:[#allocation5 + $0x2c4] ss:$8 sps:$4 sm:$0xff]  }
 0x14f   :  { %3496 = vrsqrt.f32 %v321_v44  ;;  %v3249_v44 = vld [vmem:[#allocation5 + $0x2d4] ss:$8 sps:$4 sm:$0xff]  }
 0x150   :  { %3498 = vrsqrt.f32 %v322_v45  ;;  %v3247_v45 = vld [vmem:[#allocation5 + $0x2d0] ss:$8 sps:$4 sm:$0xff]  }
 0x151   :  { %947 = vmatpush1.bf16.msra.mxu0 %v3220_v27 }
 0x152   :  { %948 = vmatprep.subr.bf16.mxu0 %v3225_v28 }
 0x155   :  { %949 = vmatpush1.bf16.msra.mxu0 %v3223_v29 }
 0x156   :  { %950 = vmatprep.subr.bf16.mxu0 %v3228_v30 }
 0x159   :  { %v3497_v51 = vpop.eup %3496  ;;  %951 = vmatpush1.bf16.msra.mxu0 %v3226_v31 }
 0x15a   :  { %v3499_v53 = vpop.eup %3498  ;;  %952 = vmatprep.subr.bf16.mxu0 %v3231_v32 }
 0x15b   :  { %v327_v54 = vcombine.low %v3497_v51, %v3499_v53  ;;  %v3258_v51 = vld [vmem:[#allocation5 + $0x304] ss:$8 sps:$4 sm:$0xff]  }
 0x15c   :  { %1285 = vmatprep.subr.bf16.mxu1 %v3258_v51 }
 0x15d   :  { %v334_v56 = vrot.slane %v327_v54, %v3663_v52  ;;  %953 = vmatpush1.bf16.msra.mxu0 %v3229_v33 }
 0x15f   :  { %v336_v59 = vmul.f32 %v334_v56, %v286_v55 }
 0x161   :  { %v341_v60 = vrot.slane %v336_v59, %v3669_v57  ;;  %v345_v61 = vrot.slane %v336_v59, %v3671_v58 }
 0x163   :  { %v348_v62 = vmul.f32 %v341_v60, %v299_v34  ;;  %v349_v63 = vmul.f32 %v345_v61, %v300_v36  ;;  %v370_v0 = vrot.slane %v345_v61, %v3669_v57  ;;  %v366_v1 = vrot.slane %v341_v60, %v3669_v57  ;;  %v3234_v34 = vld [vmem:[#allocation5 + $0x284] ss:$8 sps:$4 sm:$0xff]   ;;  %v3237_v36 = vld [vmem:[#allocation5 + $0x294] ss:$8 sps:$4 sm:$0xff]  }
 0x164   :  { %954 = vmatprep.subr.bf16.mxu0 %v3234_v34 }
 0x165   :  { %v352_v2 = vcombine.low %v348_v62, %v349_v63  ;;  %v372_v3 = vmul.f32 %v370_v0, %v281_v9  ;;  %v371_v4 = vmul.f32 %v366_v1, %v3657_v6  ;;  %955 = vmatpush1.bf16.msra.mxu0 %v3232_v35 }
 0x166   :  { %956 = vmatprep.subr.bf16.mxu0 %v3237_v36  ;;  %v2907_v36 = vld [vmem:[%s3792_s2 + $0x4] sm:$0xf] }
 0x167   :  { %v359_v5 = vrot.slane %v352_v2, %v3663_v52 }
 0x169   :  { %v360_v7 = vrot.slane %v359_v5, 7  ;;  %957 = vmatpush1.bf16.msra.mxu0 %v3235_v37 }
 0x16a   :  { %958 = vmatprep.subr.bf16.mxu0 %v3240_v38 }
 0x16b   :  { %v362_v11 = vsub.f32 %v286_v55, %v360_v7 }
 0x16d   :  { %v381_v12 = vrot.slane %v362_v11, %v3681_v10  ;;  %v377_v13 = vrot.slane %v362_v11, %v3679_v8  ;;  %959 = vmatpush1.bf16.msra.mxu0 %v3238_v39 }
 0x16e   :  { %960 = vmatprep.subr.bf16.mxu0 %v3243_v40 }
 0x16f   :  { %v391_v14 = vrot.slane %v381_v12, %v3679_v8  ;;  %v387_v15 = vrot.slane %v377_v13, %v3679_v8 }
 0x171   :  { %v393_v16 = vadd.f32 %v391_v14, %v372_v3  ;;  %v392_v9 = vadd.f32 %v387_v15, %v371_v4  ;;  %961 = vmatpush1.bf16.msra.mxu0 %v3241_v41 }
 0x172   :  { %962 = vmatprep.subr.bf16.mxu0 %v3246_v43 }
 0x173   :  { %v395_v17 = vmax.f32 %v393_v16, 0.0  ;;  %v394_v6 = vmax.f32 %v392_v9, 0.0 }
 0x175   :  { %v430_v18 = vpack.c.bf16 %v395_v17, %v395_v17  ;;  %v429_v19 = vpack.c.bf16 %v394_v6, %v394_v6  ;;  %963 = vmatpush1.bf16.msra.mxu0 %v3244_v42 }
 0x176   :  { %964 = vmatprep.subr.bf16.mxu0 %v3249_v44 }
 0x177   :  { %623 = vmatprep.mubr.bf16.mxu1 %v430_v18 }
 0x178   :  { %624 = vmatmul.mubr.bf16.vlgmr.msra.gmra.mrb[0].mxu1 %v429_v19 }
 0x179   :  { %965 = vmatpush1.bf16.msra.mxu0 %v3247_v45  ;;  %1286 = vmatpush1.bf16.msra.mxu1 %v3256_v50 }
 0x17a   :  { %966 = vmatprep.subr.bf16.mxu0 %v3252_v46 }
 0x17d   :  { %967 = vmatpush1.bf16.msra.mxu0 %v3250_v47 }
 0x17e   :  { %968 = vmatprep.subr.bf16.mxu0 %v3255_v48 }
 0x181   :  { %969 = vmatpush1.bf16.msra.mxu0 %v3253_v49 }
 0x24b   :  { %v625_v53 = vpop.f32.mrb[0].mxu1 }
 0x24c   :  { %v634_v54 = vrot.slane %v625_v53, 4  ;;  %v648_v55 = vmul.f32 %v625_v53, %v625_v53  ;;  %v627_v56 = vpop.f32.mrb[1].mxu1 }
 0x24d   :  { %v640_v59 = vrot.slane %v627_v56, 4  ;;  %v649_v60 = vmul.f32 %v627_v56, %v627_v56  ;;  %v629_v61 = vpop.f32.mrb[2].mxu1 }
 0x24e   :  { %v635_v62 = vadd.f32 %v634_v54, %v625_v53  ;;  %v650_v63 = vrot.slane %v648_v55, 4  ;;  %v630_v0 = vpop.f32.mrb[3].mxu1 }
 0x24f   :  { %v641_v1 = vadd.f32 %v640_v59, %v627_v56  ;;  %v656_v2 = vrot.slane %v649_v60, 4 }
 0x250   :  { %v636_v3 = vrot.slane %v635_v62, 2  ;;  %v651_v4 = vadd.f32 %v650_v63, %v648_v55 }
 0x251   :  { %v642_v5 = vrot.slane %v641_v1, 2  ;;  %v657_v7 = vadd.f32 %v656_v2, %v649_v60  ;;  %v3264_v2 = vld [vmem:[#allocation5 + $0x324] ss:$8 sps:$4 sm:$0xff]  }
 0x252   :  { %v637_v11 = vadd.f32 %v636_v3, %v635_v62  ;;  %v652_v12 = vrot.slane %v651_v4, 2  ;;  %v3262_v3 = vld [vmem:[#allocation5 + $0x320] ss:$8 sps:$4 sm:$0xff]  }
 0x253   :  { %v643_v13 = vadd.f32 %v642_v5, %v641_v1  ;;  %v658_v14 = vrot.slane %v657_v7, 2  ;;  %v3265_v5 = vld [vmem:[#allocation5 + $0x330] ss:$8 sps:$4 sm:$0xff]  }
 0x254   :  { %v638_v15 = vrot.slane %v637_v11, 1  ;;  %v653_v16 = vadd.f32 %v652_v12, %v651_v4  ;;  %v3267_v4 = vld [vmem:[#allocation5 + $0x334] ss:$8 sps:$4 sm:$0xff]  }
 0x255   :  { %v644_v9 = vrot.slane %v643_v13, 1  ;;  %v659_v17 = vadd.f32 %v658_v14, %v657_v7  ;;  %v3270_v7 = vld [vmem:[#allocation5 + $0x344] ss:$8 sps:$4 sm:$0xff]   ;;  %v3273_v12 = vld [vmem:[#allocation5 + $0x354] ss:$8 sps:$4 sm:$0xff]  }
 0x256   :  { %v639_v6 = vadd.f32 %v638_v15, %v637_v11  ;;  %v654_v18 = vrot.slane %v653_v16, 1  ;;  %v3268_v11 = vld [vmem:[#allocation5 + $0x340] ss:$8 sps:$4 sm:$0xff]   ;;  %v3276_v14 = vld [vmem:[#allocation5 + $0x364] ss:$8 sps:$4 sm:$0xff]  }
 0x257   :  { %v645_v19 = vadd.f32 %v644_v9, %v643_v13  ;;  %v660_v20 = vrot.slane %v659_v17, 1  ;;  %v3271_v13 = vld [vmem:[#allocation5 + $0x350] ss:$8 sps:$4 sm:$0xff]   ;;  %v3274_v15 = vld [vmem:[#allocation5 + $0x360] ss:$8 sps:$4 sm:$0xff]  }
 0x258   :  { %v646_v21 = vmul.f32 0.125, %v639_v6  ;;  %v655_v22 = vadd.f32 %v654_v18, %v653_v16  ;;  %v3279_v16 = vld [vmem:[#allocation5 + $0x374] ss:$8 sps:$4 sm:$0xff]   ;;  %v3277_v9 = vld [vmem:[#allocation5 + $0x370] ss:$8 sps:$4 sm:$0xff]  }
 0x259   :  { %v647_v23 = vmul.f32 0.125, %v645_v19  ;;  %v661_v24 = vadd.f32 %v660_v20, %v659_v17  ;;  %v3282_v17 = vld [vmem:[#allocation5 + $0x384] ss:$8 sps:$4 sm:$0xff]   ;;  %v3280_v6 = vld [vmem:[#allocation5 + $0x380] ss:$8 sps:$4 sm:$0xff]  }
 0x25a   :  { %v662_v25 = vmul.f32 0.125, %v655_v22  ;;  %v664_v26 = vmul.f32 %v646_v21, %v646_v21  ;;  %v3285_v18 = vld [vmem:[#allocation5 + $0x394] ss:$8 sps:$4 sm:$0xff]   ;;  %v3283_v19 = vld [vmem:[#allocation5 + $0x390] ss:$8 sps:$4 sm:$0xff]  }
 0x25b   :  { %v663_v27 = vmul.f32 0.125, %v661_v24  ;;  %v665_v28 = vmul.f32 %v647_v23, %v647_v23  ;;  %v3288_v20 = vld [vmem:[#allocation5 + $0x3a4] ss:$8 sps:$4 sm:$0xff]   ;;  %v3291_v22 = vld [vmem:[#allocation5 + $0x3b4] ss:$8 sps:$4 sm:$0xff]  }
 0x25c   :  { %v666_v29 = vsub.f32 %v662_v25, %v664_v26  ;;  %v3292_v24 = vld [vmem:[#allocation5 + $0x3c0] ss:$8 sps:$4 sm:$0xff]   ;;  %v3294_v25 = vld [vmem:[#allocation5 + $0x3c4] ss:$8 sps:$4 sm:$0xff]   ;;  %v3297_v26 = vld [vmem:[#allocation5 + $0x3d4] ss:$8 sps:$4 sm:$0xff]  }
 0x25d   :  { %v667_v30 = vsub.f32 %v663_v27, %v665_v28  ;;  %v3295_v27 = vld [vmem:[#allocation5 + $0x3d0] ss:$8 sps:$4 sm:$0xff]   ;;  %v3300_v28 = vld [vmem:[#allocation5 + $0x3e4] ss:$8 sps:$4 sm:$0xff]  }
 0x25e   :  { %v668_v31 = vadd.f32 1e-05, %v666_v29  ;;  %v3298_v29 = vld [vmem:[#allocation5 + $0x3e0] ss:$8 sps:$4 sm:$0xff]  }
 0x25f   :  { %v669_v32 = vadd.f32 1e-05, %v667_v30  ;;  %v3303_v30 = vld [vmem:[#allocation5 + $0x3f4] ss:$8 sps:$4 sm:$0xff]  }
 0x260   :  { %3500 = vrsqrt.f32 %v668_v31  ;;  %v3301_v31 = vld [vmem:[#allocation5 + $0x3f0] ss:$8 sps:$4 sm:$0xff]  }
 0x261   :  { %3502 = vrsqrt.f32 %v669_v32  ;;  %v3304_v32 = vld [vmem:[#allocation5 + $0x400] ss:$8 sps:$4 sm:$0xff]  }
 0x26a   :  { %v3501_v33 = vpop.eup %3500 }
 0x26b   :  { %v3503_v34 = vpop.eup %3502 }
 0x26c   :  { %v674_v35 = vcombine.low %v3501_v33, %v3503_v34  ;;  %v3306_v33 = vld [vmem:[#allocation5 + $0x404] ss:$8 sps:$4 sm:$0xff]  }
 0x26d   :  { %1632 = vmatprep.subr.bf16.mxu0 %v3306_v33 }
 0x26e   :  { %v681_v37 = vrot.slane %v674_v35, %v3663_v52 }
 0x270   :  { %v683_v38 = vmul.f32 %v2907_v36, %v681_v37 }
 0x272   :  { %v688_v39 = vrot.slane %v683_v38, %v3669_v57  ;;  %v692_v40 = vrot.slane %v683_v38, %v3671_v58 }
 0x274   :  { %v695_v41 = vmul.f32 %v688_v39, %v646_v21  ;;  %v696_v42 = vmul.f32 %v692_v40, %v647_v23  ;;  %v717_v43 = vrot.slane %v692_v40, %v3669_v57  ;;  %v713_v44 = vrot.slane %v688_v39, %v3669_v57  ;;  %v3286_v21 = vld [vmem:[#allocation5 + $0x3a0] ss:$8 sps:$4 sm:$0xff]   ;;  %v3289_v23 = vld [vmem:[#allocation5 + $0x3b0] ss:$8 sps:$4 sm:$0xff]  }
 0x276   :  { %v699_v45 = vcombine.low %v695_v41, %v696_v42  ;;  %v719_v46 = vmul.f32 %v717_v43, %v627_v56  ;;  %v718_v47 = vmul.f32 %v713_v44, %v625_v53  ;;  %v3261_v53 = vld [vmem:[#allocation5 + $0x314] ss:$8 sps:$4 sm:$0xff]   ;;  %v3259_v56 = vld [vmem:[#allocation5 + $0x310] ss:$8 sps:$4 sm:$0xff]  }
 0x277   :  { %1287 = vmatprep.subr.bf16.mxu1 %v3261_v53 }
 0x278   :  { %v706_v48 = vrot.slane %v699_v45, %v3663_v52  ;;  %1288 = vmatpush1.bf16.msra.mxu1 %v3259_v56 }
 0x279   :  { %1289 = vmatprep.subr.bf16.mxu1 %v3264_v2 }
 0x27a   :  { %v707_v49 = vrot.slane %v706_v48, 7 }
 0x27c   :  { %v709_v50 = vsub.f32 %v2907_v36, %v707_v49  ;;  %1290 = vmatpush1.bf16.msra.mxu1 %v3262_v3 }
 0x27d   :  { %1291 = vmatprep.subr.bf16.mxu1 %v3267_v4 }
 0x27e   :  { %v728_v51 = vrot.slane %v709_v50, %v3681_v10  ;;  %v724_v54 = vrot.slane %v709_v50, %v3679_v8 }
 0x280   :  { %v738_v55 = vrot.slane %v728_v51, %v3679_v8  ;;  %v734_v59 = vrot.slane %v724_v54, %v3679_v8  ;;  %1292 = vmatpush1.bf16.msra.mxu1 %v3265_v5 }
 0x281   :  { %1293 = vmatprep.subr.bf16.mxu1 %v3270_v7 }
 0x282   :  { %v740_v60 = vadd.f32 %v738_v55, %v719_v46  ;;  %v739_v61 = vadd.f32 %v734_v59, %v718_v47 }
 0x284   :  { %v742_v62 = vmax.f32 %v740_v60, 0.0  ;;  %v741_v63 = vmax.f32 %v739_v61, 0.0  ;;  %1294 = vmatpush1.bf16.msra.mxu1 %v3268_v11 }
 0x285   :  { %1295 = vmatprep.subr.bf16.mxu1 %v3273_v12 }
 0x286   :  { %v777_v0 = vpack.c.bf16 %v742_v62, %v742_v62  ;;  %v776_v1 = vpack.c.bf16 %v741_v63, %v741_v63 }
 0x288   :  { %970 = vmatprep.mubr.bf16.mxu0 %v777_v0  ;;  %1296 = vmatpush1.bf16.msra.mxu1 %v3271_v13 }
 0x289   :  { %971 = vmatmul.mubr.bf16.vlgmr.msra.gmra.mrb[4].mxu0 %v776_v1  ;;  %1297 = vmatprep.subr.bf16.mxu1 %v3276_v14 }
 0x28a   :  { %1633 = vmatpush1.bf16.msra.mxu0 %v3304_v32 }
 0x28c   :  { %1298 = vmatpush1.bf16.msra.mxu1 %v3274_v15 }
 0x28d   :  { %1299 = vmatprep.subr.bf16.mxu1 %v3279_v16 }
 0x290   :  { %1300 = vmatpush1.bf16.msra.mxu1 %v3277_v9 }
 0x291   :  { %1301 = vmatprep.subr.bf16.mxu1 %v3282_v17 }
 0x294   :  { %1302 = vmatpush1.bf16.msra.mxu1 %v3280_v6 }
 0x295   :  { %1303 = vmatprep.subr.bf16.mxu1 %v3285_v18  ;;  %v2940_v18 = vld [vmem:[%s3792_s2 + $0x8] sm:$0xf] }
 0x298   :  { %1304 = vmatpush1.bf16.msra.mxu1 %v3283_v19 }
 0x299   :  { %1305 = vmatprep.subr.bf16.mxu1 %v3288_v20 }
 0x29c   :  { %1306 = vmatpush1.bf16.msra.mxu1 %v3286_v21 }
 0x29d   :  { %1307 = vmatprep.subr.bf16.mxu1 %v3291_v22 }
 0x2a0   :  { %1308 = vmatpush1.bf16.msra.mxu1 %v3289_v23 }
 0x2a1   :  { %1309 = vmatprep.subr.bf16.mxu1 %v3294_v25 }
 0x2a4   :  { %1310 = vmatpush1.bf16.msra.mxu1 %v3292_v24 }
 0x2a5   :  { %1311 = vmatprep.subr.bf16.mxu1 %v3297_v26 }
 0x2a8   :  { %1312 = vmatpush1.bf16.msra.mxu1 %v3295_v27 }
 0x2a9   :  { %1313 = vmatprep.subr.bf16.mxu1 %v3300_v28 }
 0x2ac   :  { %1314 = vmatpush1.bf16.msra.mxu1 %v3298_v29 }
 0x2ad   :  { %1315 = vmatprep.subr.bf16.mxu1 %v3303_v30 }
 0x2b0   :  { %1316 = vmatpush1.bf16.msra.mxu1 %v3301_v31 }
 0x35c   :  { %v972_v34 = vpop.f32.mrb[4].mxu0 }
 0x35d   :  { %v981_v35 = vrot.slane %v972_v34, 4  ;;  %v995_v36 = vmul.f32 %v972_v34, %v972_v34  ;;  %v974_v37 = vpop.f32.mrb[5].mxu0 }
 0x35e   :  { %v987_v38 = vrot.slane %v974_v37, 4  ;;  %v996_v39 = vmul.f32 %v974_v37, %v974_v37  ;;  %v976_v40 = vpop.f32.mrb[6].mxu0 }
 0x35f   :  { %v982_v41 = vadd.f32 %v981_v35, %v972_v34  ;;  %v997_v42 = vrot.slane %v995_v36, 4  ;;  %v977_v43 = vpop.f32.mrb[7].mxu0 }
 0x360   :  { %v988_v44 = vadd.f32 %v987_v38, %v974_v37  ;;  %v1003_v45 = vrot.slane %v996_v39, 4 }
 0x361   :  { %v983_v46 = vrot.slane %v982_v41, 2  ;;  %v998_v47 = vadd.f32 %v997_v42, %v995_v36 }
 0x362   :  { %v989_v48 = vrot.slane %v988_v44, 2  ;;  %v1004_v49 = vadd.f32 %v1003_v45, %v996_v39  ;;  %v3312_v45 = vld [vmem:[#allocation5 + $0x424] ss:$8 sps:$4 sm:$0xff]  }
 0x363   :  { %v984_v50 = vadd.f32 %v983_v46, %v982_v41  ;;  %v999_v51 = vrot.slane %v998_v47, 2  ;;  %v3310_v46 = vld [vmem:[#allocation5 + $0x420] ss:$8 sps:$4 sm:$0xff]  }
 0x364   :  { %v990_v54 = vadd.f32 %v989_v48, %v988_v44  ;;  %v1005_v55 = vrot.slane %v1004_v49, 2  ;;  %v3313_v48 = vld [vmem:[#allocation5 + $0x430] ss:$8 sps:$4 sm:$0xff]  }
 0x365   :  { %v985_v59 = vrot.slane %v984_v50, 1  ;;  %v1000_v60 = vadd.f32 %v999_v51, %v998_v47  ;;  %v3315_v47 = vld [vmem:[#allocation5 + $0x434] ss:$8 sps:$4 sm:$0xff]  }
 0x366   :  { %v991_v61 = vrot.slane %v990_v54, 1  ;;  %v1006_v62 = vadd.f32 %v1005_v55, %v1004_v49  ;;  %v3318_v49 = vld [vmem:[#allocation5 + $0x444] ss:$8 sps:$4 sm:$0xff]   ;;  %v3321_v51 = vld [vmem:[#allocation5 + $0x454] ss:$8 sps:$4 sm:$0xff]  }
 0x367   :  { %v986_v63 = vadd.f32 %v985_v59, %v984_v50  ;;  %v1001_v0 = vrot.slane %v1000_v60, 1  ;;  %v3316_v50 = vld [vmem:[#allocation5 + $0x440] ss:$8 sps:$4 sm:$0xff]   ;;  %v3324_v55 = vld [vmem:[#allocation5 + $0x464] ss:$8 sps:$4 sm:$0xff]  }
 0x368   :  { %v992_v1 = vadd.f32 %v991_v61, %v990_v54  ;;  %v1007_v53 = vrot.slane %v1006_v62, 1  ;;  %v3319_v54 = vld [vmem:[#allocation5 + $0x450] ss:$8 sps:$4 sm:$0xff]   ;;  %v3322_v59 = vld [vmem:[#allocation5 + $0x460] ss:$8 sps:$4 sm:$0xff]  }
 0x369   :  { %v993_v56 = vmul.f32 0.125, %v986_v63  ;;  %v1002_v2 = vadd.f32 %v1001_v0, %v1000_v60  ;;  %v3327_v60 = vld [vmem:[#allocation5 + $0x474] ss:$8 sps:$4 sm:$0xff]   ;;  %v3325_v61 = vld [vmem:[#allocation5 + $0x470] ss:$8 sps:$4 sm:$0xff]  }
 0x36a   :  { %v994_v3 = vmul.f32 0.125, %v992_v1  ;;  %v1008_v4 = vadd.f32 %v1007_v53, %v1006_v62  ;;  %v3330_v62 = vld [vmem:[#allocation5 + $0x484] ss:$8 sps:$4 sm:$0xff]   ;;  %v3328_v63 = vld [vmem:[#allocation5 + $0x480] ss:$8 sps:$4 sm:$0xff]  }
 0x36b   :  { %v1009_v5 = vmul.f32 0.125, %v1002_v2  ;;  %v1011_v7 = vmul.f32 %v993_v56, %v993_v56  ;;  %v3333_v0 = vld [vmem:[#allocation5 + $0x494] ss:$8 sps:$4 sm:$0xff]   ;;  %v3331_v1 = vld [vmem:[#allocation5 + $0x490] ss:$8 sps:$4 sm:$0xff]  }
 0x36c   :  { %v1010_v11 = vmul.f32 0.125, %v1008_v4  ;;  %v1012_v12 = vmul.f32 %v994_v3, %v994_v3  ;;  %v3336_v53 = vld [vmem:[#allocation5 + $0x4a4] ss:$8 sps:$4 sm:$0xff]   ;;  %v3339_v2 = vld [vmem:[#allocation5 + $0x4b4] ss:$8 sps:$4 sm:$0xff]  }
 0x36d   :  { %v1013_v13 = vsub.f32 %v1009_v5, %v1011_v7  ;;  %v3340_v4 = vld [vmem:[#allocation5 + $0x4c0] ss:$8 sps:$4 sm:$0xff]   ;;  %v3342_v5 = vld [vmem:[#allocation5 + $0x4c4] ss:$8 sps:$4 sm:$0xff]   ;;  %v3345_v7 = vld [vmem:[#allocation5 + $0x4d4] ss:$8 sps:$4 sm:$0xff]  }
 0x36e   :  { %v1014_v14 = vsub.f32 %v1010_v11, %v1012_v12  ;;  %v3343_v11 = vld [vmem:[#allocation5 + $0x4d0] ss:$8 sps:$4 sm:$0xff]   ;;  %v3348_v12 = vld [vmem:[#allocation5 + $0x4e4] ss:$8 sps:$4 sm:$0xff]  }
 0x36f   :  { %v1015_v15 = vadd.f32 1e-05, %v1013_v13  ;;  %v3346_v13 = vld [vmem:[#allocation5 + $0x4e0] ss:$8 sps:$4 sm:$0xff]  }
 0x370   :  { %v1016_v16 = vadd.f32 1e-05, %v1014_v14  ;;  %v3351_v14 = vld [vmem:[#allocation5 + $0x4f4] ss:$8 sps:$4 sm:$0xff]  }
 0x371   :  { %3504 = vrsqrt.f32 %v1015_v15  ;;  %v3349_v15 = vld [vmem:[#allocation5 + $0x4f0] ss:$8 sps:$4 sm:$0xff]  }
 0x372   :  { %3506 = vrsqrt.f32 %v1016_v16  ;;  %v3352_v16 = vld [vmem:[#allocation5 + $0x500] ss:$8 sps:$4 sm:$0xff]  }
 0x37b   :  { %v3505_v9 = vpop.eup %3504 }
 0x37c   :  { %v3507_v17 = vpop.eup %3506 }
 0x37d   :  { %v1021_v6 = vcombine.low %v3505_v9, %v3507_v17  ;;  %v3354_v9 = vld [vmem:[#allocation5 + $0x504] ss:$8 sps:$4 sm:$0xff]  }
 0x37e   :  { %1979 = vmatprep.subr.bf16.mxu1 %v3354_v9 }
 0x37f   :  { %v1028_v19 = vrot.slane %v1021_v6, %v3663_v52 }
 0x381   :  { %v1030_v20 = vmul.f32 %v2940_v18, %v1028_v19 }
 0x383   :  { %v1035_v21 = vrot.slane %v1030_v20, %v3669_v57  ;;  %v1039_v22 = vrot.slane %v1030_v20, %v3671_v58 }
 0x385   :  { %v1042_v23 = vmul.f32 %v1035_v21, %v993_v56  ;;  %v1043_v24 = vmul.f32 %v1039_v22, %v994_v3  ;;  %v1064_v25 = vrot.slane %v1039_v22, %v3669_v57  ;;  %v1060_v26 = vrot.slane %v1035_v21, %v3669_v57  ;;  %v3334_v56 = vld [vmem:[#allocation5 + $0x4a0] ss:$8 sps:$4 sm:$0xff]   ;;  %v3337_v3 = vld [vmem:[#allocation5 + $0x4b0] ss:$8 sps:$4 sm:$0xff]  }
 0x387   :  { %v1046_v27 = vcombine.low %v1042_v23, %v1043_v24  ;;  %v1066_v28 = vmul.f32 %v1064_v25, %v974_v37  ;;  %v1065_v29 = vmul.f32 %v1060_v26, %v972_v34  ;;  %v3309_v34 = vld [vmem:[#allocation5 + $0x414] ss:$8 sps:$4 sm:$0xff]   ;;  %v3307_v37 = vld [vmem:[#allocation5 + $0x410] ss:$8 sps:$4 sm:$0xff]  }
 0x388   :  { %1634 = vmatprep.subr.bf16.mxu0 %v3309_v34 }
 0x389   :  { %v1053_v30 = vrot.slane %v1046_v27, %v3663_v52  ;;  %1635 = vmatpush1.bf16.msra.mxu0 %v3307_v37 }
 0x38a   :  { %1636 = vmatprep.subr.bf16.mxu0 %v3312_v45 }
 0x38b   :  { %v1054_v31 = vrot.slane %v1053_v30, 7 }
 0x38d   :  { %v1056_v32 = vsub.f32 %v2940_v18, %v1054_v31  ;;  %1637 = vmatpush1.bf16.msra.mxu0 %v3310_v46 }
 0x38e   :  { %1638 = vmatprep.subr.bf16.mxu0 %v3315_v47 }
 0x38f   :  { %v1075_v33 = vrot.slane %v1056_v32, %v3681_v10  ;;  %v1071_v35 = vrot.slane %v1056_v32, %v3679_v8 }
 0x391   :  { %v1085_v36 = vrot.slane %v1075_v33, %v3679_v8  ;;  %v1081_v38 = vrot.slane %v1071_v35, %v3679_v8  ;;  %1639 = vmatpush1.bf16.msra.mxu0 %v3313_v48 }
 0x392   :  { %1640 = vmatprep.subr.bf16.mxu0 %v3318_v49 }
 0x393   :  { %v1087_v39 = vadd.f32 %v1085_v36, %v1066_v28  ;;  %v1086_v40 = vadd.f32 %v1081_v38, %v1065_v29 }
 0x395   :  { %v1089_v41 = vmax.f32 %v1087_v39, 0.0  ;;  %v1088_v42 = vmax.f32 %v1086_v40, 0.0  ;;  %1641 = vmatpush1.bf16.msra.mxu0 %v3316_v50 }
 0x396   :  { %1642 = vmatprep.subr.bf16.mxu0 %v3321_v51 }
 0x397   :  { %v1124_v43 = vpack.c.bf16 %v1089_v41, %v1089_v41  ;;  %v1123_v44 = vpack.c.bf16 %v1088_v42, %v1088_v42 }
 0x399   :  { %1317 = vmatprep.mubr.bf16.mxu1 %v1124_v43  ;;  %1643 = vmatpush1.bf16.msra.mxu0 %v3319_v54 }
 0x39a   :  { %1318 = vmatmul.mubr.bf16.vlgmr.msra.gmra.mrb[4].mxu1 %v1123_v44  ;;  %1644 = vmatprep.subr.bf16.mxu0 %v3324_v55 }
 0x39b   :  { %1980 = vmatpush1.bf16.msra.mxu1 %v3352_v16 }
 0x39d   :  { %1645 = vmatpush1.bf16.msra.mxu0 %v3322_v59 }
 0x39e   :  { %1646 = vmatprep.subr.bf16.mxu0 %v3327_v60 }
 0x3a1   :  { %1647 = vmatpush1.bf16.msra.mxu0 %v3325_v61 }
 0x3a2   :  { %1648 = vmatprep.subr.bf16.mxu0 %v3330_v62 }
 0x3a5   :  { %1649 = vmatpush1.bf16.msra.mxu0 %v3328_v63 }
 0x3a6   :  { %1650 = vmatprep.subr.bf16.mxu0 %v3333_v0  ;;  %v2973_v0 = vld [vmem:[%s3792_s2 + $0xc] sm:$0xf] }
 0x3a9   :  { %1651 = vmatpush1.bf16.msra.mxu0 %v3331_v1 }
 0x3aa   :  { %1652 = vmatprep.subr.bf16.mxu0 %v3336_v53 }
 0x3ad   :  { %1653 = vmatpush1.bf16.msra.mxu0 %v3334_v56 }
 0x3ae   :  { %1654 = vmatprep.subr.bf16.mxu0 %v3339_v2 }
 0x3b1   :  { %1655 = vmatpush1.bf16.msra.mxu0 %v3337_v3 }
 0x3b2   :  { %1656 = vmatprep.subr.bf16.mxu0 %v3342_v5 }
 0x3b5   :  { %1657 = vmatpush1.bf16.msra.mxu0 %v3340_v4 }
 0x3b6   :  { %1658 = vmatprep.subr.bf16.mxu0 %v3345_v7 }
 0x3b9   :  { %1659 = vmatpush1.bf16.msra.mxu0 %v3343_v11 }
 0x3ba   :  { %1660 = vmatprep.subr.bf16.mxu0 %v3348_v12 }
 0x3bd   :  { %1661 = vmatpush1.bf16.msra.mxu0 %v3346_v13 }
 0x3be   :  { %1662 = vmatprep.subr.bf16.mxu0 %v3351_v14 }
 0x3c1   :  { %1663 = vmatpush1.bf16.msra.mxu0 %v3349_v15 }
 0x46d   :  { %v1319_v17 = vpop.f32.mrb[4].mxu1 }
 0x46e   :  { %v1328_v6 = vrot.slane %v1319_v17, 4  ;;  %v1342_v18 = vmul.f32 %v1319_v17, %v1319_v17  ;;  %v1321_v19 = vpop.f32.mrb[5].mxu1 }
 0x46f   :  { %v1334_v20 = vrot.slane %v1321_v19, 4  ;;  %v1343_v21 = vmul.f32 %v1321_v19, %v1321_v19  ;;  %v1323_v22 = vpop.f32.mrb[6].mxu1 }
 0x470   :  { %v1329_v23 = vadd.f32 %v1328_v6, %v1319_v17  ;;  %v1344_v24 = vrot.slane %v1342_v18, 4  ;;  %v1324_v25 = vpop.f32.mrb[7].mxu1 }
 0x471   :  { %v1335_v26 = vadd.f32 %v1334_v20, %v1321_v19  ;;  %v1350_v27 = vrot.slane %v1343_v21, 4 }
 0x472   :  { %v1330_v28 = vrot.slane %v1329_v23, 2  ;;  %v1345_v29 = vadd.f32 %v1344_v24, %v1342_v18 }
 0x473   :  { %v1336_v30 = vrot.slane %v1335_v26, 2  ;;  %v1351_v31 = vadd.f32 %v1350_v27, %v1343_v21  ;;  %v3360_v27 = vld [vmem:[#allocation5 + $0x524] ss:$8 sps:$4 sm:$0xff]  }
 0x474   :  { %v1331_v32 = vadd.f32 %v1330_v28, %v1329_v23  ;;  %v1346_v33 = vrot.slane %v1345_v29, 2  ;;  %v3358_v28 = vld [vmem:[#allocation5 + $0x520] ss:$8 sps:$4 sm:$0xff]  }
 0x475   :  { %v1337_v35 = vadd.f32 %v1336_v30, %v1335_v26  ;;  %v1352_v36 = vrot.slane %v1351_v31, 2  ;;  %v3361_v30 = vld [vmem:[#allocation5 + $0x530] ss:$8 sps:$4 sm:$0xff]  }
 0x476   :  { %v1332_v38 = vrot.slane %v1331_v32, 1  ;;  %v1347_v39 = vadd.f32 %v1346_v33, %v1345_v29  ;;  %v3363_v29 = vld [vmem:[#allocation5 + $0x534] ss:$8 sps:$4 sm:$0xff]  }
 0x477   :  { %v1338_v40 = vrot.slane %v1337_v35, 1  ;;  %v1353_v41 = vadd.f32 %v1352_v36, %v1351_v31  ;;  %v3366_v31 = vld [vmem:[#allocation5 + $0x544] ss:$8 sps:$4 sm:$0xff]   ;;  %v3369_v33 = vld [vmem:[#allocation5 + $0x554] ss:$8 sps:$4 sm:$0xff]  }
 0x478   :  { %v1333_v42 = vadd.f32 %v1332_v38, %v1331_v32  ;;  %v1348_v43 = vrot.slane %v1347_v39, 1  ;;  %v3364_v32 = vld [vmem:[#allocation5 + $0x540] ss:$8 sps:$4 sm:$0xff]   ;;  %v3372_v36 = vld [vmem:[#allocation5 + $0x564] ss:$8 sps:$4 sm:$0xff]  }
 0x479   :  { %v1339_v44 = vadd.f32 %v1338_v40, %v1337_v35  ;;  %v1354_v34 = vrot.slane %v1353_v41, 1  ;;  %v3367_v35 = vld [vmem:[#allocation5 + $0x550] ss:$8 sps:$4 sm:$0xff]   ;;  %v3370_v38 = vld [vmem:[#allocation5 + $0x560] ss:$8 sps:$4 sm:$0xff]  }
 0x47a   :  { %v1340_v37 = vmul.f32 0.125, %v1333_v42  ;;  %v1349_v45 = vadd.f32 %v1348_v43, %v1347_v39  ;;  %v3375_v39 = vld [vmem:[#allocation5 + $0x574] ss:$8 sps:$4 sm:$0xff]   ;;  %v3373_v40 = vld [vmem:[#allocation5 + $0x570] ss:$8 sps:$4 sm:$0xff]  }
 0x47b   :  { %v1341_v46 = vmul.f32 0.125, %v1339_v44  ;;  %v1355_v47 = vadd.f32 %v1354_v34, %v1353_v41  ;;  %v3378_v41 = vld [vmem:[#allocation5 + $0x584] ss:$8 sps:$4 sm:$0xff]   ;;  %v3376_v42 = vld [vmem:[#allocation5 + $0x580] ss:$8 sps:$4 sm:$0xff]  }
 0x47c   :  { %v1356_v48 = vmul.f32 0.125, %v1349_v45  ;;  %v1358_v49 = vmul.f32 %v1340_v37, %v1340_v37  ;;  %v3381_v43 = vld [vmem:[#allocation5 + $0x594] ss:$8 sps:$4 sm:$0xff]   ;;  %v3379_v44 = vld [vmem:[#allocation5 + $0x590] ss:$8 sps:$4 sm:$0xff]  }
 0x47d   :  { %v1357_v50 = vmul.f32 0.125, %v1355_v47  ;;  %v1359_v51 = vmul.f32 %v1341_v46, %v1341_v46  ;;  %v3384_v34 = vld [vmem:[#allocation5 + $0x5a4] ss:$8 sps:$4 sm:$0xff]   ;;  %v3387_v45 = vld [vmem:[#allocation5 + $0x5b4] ss:$8 sps:$4 sm:$0xff]  }
 0x47e   :  { %v1360_v54 = vsub.f32 %v1356_v48, %v1358_v49  ;;  %v3388_v47 = vld [vmem:[#allocation5 + $0x5c0] ss:$8 sps:$4 sm:$0xff]   ;;  %v3390_v48 = vld [vmem:[#allocation5 + $0x5c4] ss:$8 sps:$4 sm:$0xff]   ;;  %v3393_v49 = vld [vmem:[#allocation5 + $0x5d4] ss:$8 sps:$4 sm:$0xff]  }
 0x47f   :  { %v1361_v55 = vsub.f32 %v1357_v50, %v1359_v51  ;;  %v3391_v50 = vld [vmem:[#allocation5 + $0x5d0] ss:$8 sps:$4 sm:$0xff]   ;;  %v3396_v51 = vld [vmem:[#allocation5 + $0x5e4] ss:$8 sps:$4 sm:$0xff]  }
 0x480   :  { %v1362_v59 = vadd.f32 1e-05, %v1360_v54  ;;  %v3394_v54 = vld [vmem:[#allocation5 + $0x5e0] ss:$8 sps:$4 sm:$0xff]  }
 0x481   :  { %v1363_v60 = vadd.f32 1e-05, %v1361_v55  ;;  %v3399_v55 = vld [vmem:[#allocation5 + $0x5f4] ss:$8 sps:$4 sm:$0xff]  }
 0x482   :  { %3508 = vrsqrt.f32 %v1362_v59  ;;  %v3397_v59 = vld [vmem:[#allocation5 + $0x5f0] ss:$8 sps:$4 sm:$0xff]  }
 0x483   :  { %3510 = vrsqrt.f32 %v1363_v60  ;;  %v3400_v60 = vld [vmem:[#allocation5 + $0x600] ss:$8 sps:$4 sm:$0xff]  }
 0x48c   :  { %v3509_v61 = vpop.eup %3508 }
 0x48d   :  { %v3511_v62 = vpop.eup %3510 }
 0x48e   :  { %v1368_v63 = vcombine.low %v3509_v61, %v3511_v62  ;;  %v3402_v61 = vld [vmem:[#allocation5 + $0x604] ss:$8 sps:$4 sm:$0xff]  }
 0x48f   :  { %2326 = vmatprep.subr.bf16.mxu0 %v3402_v61 }
 0x490   :  { %v1375_v1 = vrot.slane %v1368_v63, %v3663_v52 }
 0x492   :  { %v1377_v53 = vmul.f32 %v2973_v0, %v1375_v1 }
 0x494   :  { %v1382_v56 = vrot.slane %v1377_v53, %v3669_v57  ;;  %v1386_v2 = vrot.slane %v1377_v53, %v3671_v58 }
 0x496   :  { %v1389_v3 = vmul.f32 %v1382_v56, %v1340_v37  ;;  %v1390_v4 = vmul.f32 %v1386_v2, %v1341_v46  ;;  %v1411_v5 = vrot.slane %v1386_v2, %v3669_v57  ;;  %v1407_v7 = vrot.slane %v1382_v56, %v3669_v57  ;;  %v3382_v37 = vld [vmem:[#allocation5 + $0x5a0] ss:$8 sps:$4 sm:$0xff]   ;;  %v3385_v46 = vld [vmem:[#allocation5 + $0x5b0] ss:$8 sps:$4 sm:$0xff]  }
 0x498   :  { %v1393_v11 = vcombine.low %v1389_v3, %v1390_v4  ;;  %v1413_v12 = vmul.f32 %v1411_v5, %v1321_v19  ;;  %v1412_v13 = vmul.f32 %v1407_v7, %v1319_v17  ;;  %v3357_v17 = vld [vmem:[#allocation5 + $0x514] ss:$8 sps:$4 sm:$0xff]   ;;  %v3355_v19 = vld [vmem:[#allocation5 + $0x510] ss:$8 sps:$4 sm:$0xff]  }
 0x499   :  { %1981 = vmatprep.subr.bf16.mxu1 %v3357_v17 }
 0x49a   :  { %v1400_v14 = vrot.slane %v1393_v11, %v3663_v52  ;;  %1982 = vmatpush1.bf16.msra.mxu1 %v3355_v19 }
 0x49b   :  { %1983 = vmatprep.subr.bf16.mxu1 %v3360_v27 }
 0x49c   :  { %v1401_v15 = vrot.slane %v1400_v14, 7 }
 0x49e   :  { %v1403_v16 = vsub.f32 %v2973_v0, %v1401_v15  ;;  %1984 = vmatpush1.bf16.msra.mxu1 %v3358_v28 }
 0x49f   :  { %1985 = vmatprep.subr.bf16.mxu1 %v3363_v29 }
 0x4a0   :  { %v1422_v9 = vrot.slane %v1403_v16, %v3681_v10  ;;  %v1418_v6 = vrot.slane %v1403_v16, %v3679_v8 }
 0x4a2   :  { %v1432_v18 = vrot.slane %v1422_v9, %v3679_v8  ;;  %v1428_v20 = vrot.slane %v1418_v6, %v3679_v8  ;;  %1986 = vmatpush1.bf16.msra.mxu1 %v3361_v30 }
 0x4a3   :  { %1987 = vmatprep.subr.bf16.mxu1 %v3366_v31 }
 0x4a4   :  { %v1434_v21 = vadd.f32 %v1432_v18, %v1413_v12  ;;  %v1433_v22 = vadd.f32 %v1428_v20, %v1412_v13 }
 0x4a6   :  { %v1436_v23 = vmax.f32 %v1434_v21, 0.0  ;;  %v1435_v24 = vmax.f32 %v1433_v22, 0.0  ;;  %1988 = vmatpush1.bf16.msra.mxu1 %v3364_v32 }
 0x4a7   :  { %1989 = vmatprep.subr.bf16.mxu1 %v3369_v33 }
 0x4a8   :  { %v1471_v25 = vpack.c.bf16 %v1436_v23, %v1436_v23  ;;  %v1470_v26 = vpack.c.bf16 %v1435_v24, %v1435_v24 }
 0x4aa   :  { %1664 = vmatprep.mubr.bf16.mxu0 %v1471_v25  ;;  %1990 = vmatpush1.bf16.msra.mxu1 %v3367_v35 }
 0x4ab   :  { %1665 = vmatmul.mubr.bf16.vlgmr.msra.gmra.mrb[8].mxu0 %v1470_v26  ;;  %1991 = vmatprep.subr.bf16.mxu1 %v3372_v36 }
 0x4ac   :  { %2327 = vmatpush1.bf16.msra.mxu0 %v3400_v60 }
 0x4ae   :  { %1992 = vmatpush1.bf16.msra.mxu1 %v3370_v38 }
 0x4af   :  { %1993 = vmatprep.subr.bf16.mxu1 %v3375_v39 }
 0x4b2   :  { %1994 = vmatpush1.bf16.msra.mxu1 %v3373_v40 }
 0x4b3   :  { %1995 = vmatprep.subr.bf16.mxu1 %v3378_v41 }
 0x4b6   :  { %1996 = vmatpush1.bf16.msra.mxu1 %v3376_v42 }
 0x4b7   :  { %1997 = vmatprep.subr.bf16.mxu1 %v3381_v43  ;;  %v3006_v43 = vld [vmem:[%s3792_s2 + $0x10] sm:$0xf] }
 0x4ba   :  { %1998 = vmatpush1.bf16.msra.mxu1 %v3379_v44 }
 0x4bb   :  { %1999 = vmatprep.subr.bf16.mxu1 %v3384_v34 }
 0x4be   :  { %2000 = vmatpush1.bf16.msra.mxu1 %v3382_v37 }
 0x4bf   :  { %2001 = vmatprep.subr.bf16.mxu1 %v3387_v45 }
 0x4c2   :  { %2002 = vmatpush1.bf16.msra.mxu1 %v3385_v46 }
 0x4c3   :  { %2003 = vmatprep.subr.bf16.mxu1 %v3390_v48 }
 0x4c6   :  { %2004 = vmatpush1.bf16.msra.mxu1 %v3388_v47 }
 0x4c7   :  { %2005 = vmatprep.subr.bf16.mxu1 %v3393_v49 }
 0x4ca   :  { %2006 = vmatpush1.bf16.msra.mxu1 %v3391_v50 }
 0x4cb   :  { %2007 = vmatprep.subr.bf16.mxu1 %v3396_v51 }
 0x4ce   :  { %2008 = vmatpush1.bf16.msra.mxu1 %v3394_v54 }
 0x4cf   :  { %2009 = vmatprep.subr.bf16.mxu1 %v3399_v55 }
 0x4d2   :  { %2010 = vmatpush1.bf16.msra.mxu1 %v3397_v59 }
 0x57e   :  { %v1666_v62 = vpop.f32.mrb[8].mxu0 }
 0x57f   :  { %v1675_v63 = vrot.slane %v1666_v62, 4  ;;  %v1689_v0 = vmul.f32 %v1666_v62, %v1666_v62  ;;  %v1668_v1 = vpop.f32.mrb[9].mxu0 }
 0x580   :  { %v1681_v53 = vrot.slane %v1668_v1, 4  ;;  %v1690_v56 = vmul.f32 %v1668_v1, %v1668_v1  ;;  %v1670_v2 = vpop.f32.mrb[10].mxu0 }
 0x581   :  { %v1676_v3 = vadd.f32 %v1675_v63, %v1666_v62  ;;  %v1691_v4 = vrot.slane %v1689_v0, 4  ;;  %v1671_v5 = vpop.f32.mrb[11].mxu0 }
 0x582   :  { %v1682_v7 = vadd.f32 %v1681_v53, %v1668_v1  ;;  %v1697_v11 = vrot.slane %v1690_v56, 4 }
 0x583   :  { %v1677_v12 = vrot.slane %v1676_v3, 2  ;;  %v1692_v13 = vadd.f32 %v1691_v4, %v1689_v0 }
 0x584   :  { %v1683_v14 = vrot.slane %v1682_v7, 2  ;;  %v1698_v15 = vadd.f32 %v1697_v11, %v1690_v56  ;;  %v3408_v11 = vld [vmem:[#allocation5 + $0x624] ss:$8 sps:$4 sm:$0xff]  }
 0x585   :  { %v1678_v16 = vadd.f32 %v1677_v12, %v1676_v3  ;;  %v1693_v9 = vrot.slane %v1692_v13, 2  ;;  %v3406_v12 = vld [vmem:[#allocation5 + $0x620] ss:$8 sps:$4 sm:$0xff]  }
 0x586   :  { %v1684_v6 = vadd.f32 %v1683_v14, %v1682_v7  ;;  %v1699_v18 = vrot.slane %v1698_v15, 2  ;;  %v3409_v14 = vld [vmem:[#allocation5 + $0x630] ss:$8 sps:$4 sm:$0xff]  }
 0x587   :  { %v1679_v20 = vrot.slane %v1678_v16, 1  ;;  %v1694_v21 = vadd.f32 %v1693_v9, %v1692_v13  ;;  %v3411_v13 = vld [vmem:[#allocation5 + $0x634] ss:$8 sps:$4 sm:$0xff]  }
 0x588   :  { %v1685_v22 = vrot.slane %v1684_v6, 1  ;;  %v1700_v23 = vadd.f32 %v1699_v18, %v1698_v15  ;;  %v3414_v15 = vld [vmem:[#allocation5 + $0x644] ss:$8 sps:$4 sm:$0xff]   ;;  %v3417_v9 = vld [vmem:[#allocation5 + $0x654] ss:$8 sps:$4 sm:$0xff]  }
 0x589   :  { %v1680_v24 = vadd.f32 %v1679_v20, %v1678_v16  ;;  %v1695_v25 = vrot.slane %v1694_v21, 1  ;;  %v3412_v16 = vld [vmem:[#allocation5 + $0x640] ss:$8 sps:$4 sm:$0xff]   ;;  %v3420_v18 = vld [vmem:[#allocation5 + $0x664] ss:$8 sps:$4 sm:$0xff]  }
 0x58a   :  { %v1686_v26 = vadd.f32 %v1685_v22, %v1684_v6  ;;  %v1701_v17 = vrot.slane %v1700_v23, 1  ;;  %v3415_v6 = vld [vmem:[#allocation5 + $0x650] ss:$8 sps:$4 sm:$0xff]   ;;  %v3418_v20 = vld [vmem:[#allocation5 + $0x660] ss:$8 sps:$4 sm:$0xff]  }
 0x58b   :  { %v1687_v19 = vmul.f32 0.125, %v1680_v24  ;;  %v1696_v27 = vadd.f32 %v1695_v25, %v1694_v21  ;;  %v3423_v21 = vld [vmem:[#allocation5 + $0x674] ss:$8 sps:$4 sm:$0xff]   ;;  %v3421_v22 = vld [vmem:[#allocation5 + $0x670] ss:$8 sps:$4 sm:$0xff]  }
 0x58c   :  { %v1688_v28 = vmul.f32 0.125, %v1686_v26  ;;  %v1702_v29 = vadd.f32 %v1701_v17, %v1700_v23  ;;  %v3426_v23 = vld [vmem:[#allocation5 + $0x684] ss:$8 sps:$4 sm:$0xff]   ;;  %v3424_v24 = vld [vmem:[#allocation5 + $0x680] ss:$8 sps:$4 sm:$0xff]  }
 0x58d   :  { %v1703_v30 = vmul.f32 0.125, %v1696_v27  ;;  %v1705_v31 = vmul.f32 %v1687_v19, %v1687_v19  ;;  %v3429_v25 = vld [vmem:[#allocation5 + $0x694] ss:$8 sps:$4 sm:$0xff]   ;;  %v3427_v26 = vld [vmem:[#allocation5 + $0x690] ss:$8 sps:$4 sm:$0xff]  }
 0x58e   :  { %v1704_v32 = vmul.f32 0.125, %v1702_v29  ;;  %v1706_v33 = vmul.f32 %v1688_v28, %v1688_v28  ;;  %v3432_v17 = vld [vmem:[#allocation5 + $0x6a4] ss:$8 sps:$4 sm:$0xff]   ;;  %v3435_v27 = vld [vmem:[#allocation5 + $0x6b4] ss:$8 sps:$4 sm:$0xff]  }
 0x58f   :  { %v1707_v35 = vsub.f32 %v1703_v30, %v1705_v31  ;;  %v3436_v29 = vld [vmem:[#allocation5 + $0x6c0] ss:$8 sps:$4 sm:$0xff]   ;;  %v3438_v30 = vld [vmem:[#allocation5 + $0x6c4] ss:$8 sps:$4 sm:$0xff]   ;;  %v3441_v31 = vld [vmem:[#allocation5 + $0x6d4] ss:$8 sps:$4 sm:$0xff]  }
 0x590   :  { %v1708_v36 = vsub.f32 %v1704_v32, %v1706_v33  ;;  %v3439_v32 = vld [vmem:[#allocation5 + $0x6d0] ss:$8 sps:$4 sm:$0xff]   ;;  %v3444_v33 = vld [vmem:[#allocation5 + $0x6e4] ss:$8 sps:$4 sm:$0xff]  }
 0x591   :  { %v1709_v38 = vadd.f32 1e-05, %v1707_v35  ;;  %v3442_v35 = vld [vmem:[#allocation5 + $0x6e0] ss:$8 sps:$4 sm:$0xff]  }
 0x592   :  { %v1710_v39 = vadd.f32 1e-05, %v1708_v36  ;;  %v3447_v36 = vld [vmem:[#allocation5 + $0x6f4] ss:$8 sps:$4 sm:$0xff]  }
 0x593   :  { %3512 = vrsqrt.f32 %v1709_v38  ;;  %v3445_v38 = vld [vmem:[#allocation5 + $0x6f0] ss:$8 sps:$4 sm:$0xff]  }
 0x594   :  { %3514 = vrsqrt.f32 %v1710_v39  ;;  %v3448_v39 = vld [vmem:[#allocation5 + $0x700] ss:$8 sps:$4 sm:$0xff]  }
 0x59d   :  { %v3513_v40 = vpop.eup %3512 }
 0x59e   :  { %v3515_v41 = vpop.eup %3514 }
 0x59f   :  { %v1715_v42 = vcombine.low %v3513_v40, %v3515_v41  ;;  %v3450_v40 = vld [vmem:[#allocation5 + $0x704] ss:$8 sps:$4 sm:$0xff]  }
 0x5a0   :  { %2673 = vmatprep.subr.bf16.mxu1 %v3450_v40 }
 0x5a1   :  { %v1722_v44 = vrot.slane %v1715_v42, %v3663_v52 }
 0x5a3   :  { %v1724_v34 = vmul.f32 %v3006_v43, %v1722_v44 }
 0x5a5   :  { %v1729_v37 = vrot.slane %v1724_v34, %v3669_v57  ;;  %v1733_v45 = vrot.slane %v1724_v34, %v3671_v58 }
 0x5a7   :  { %v1736_v46 = vmul.f32 %v1729_v37, %v1687_v19  ;;  %v1737_v47 = vmul.f32 %v1733_v45, %v1688_v28  ;;  %v1758_v48 = vrot.slane %v1733_v45, %v3669_v57  ;;  %v1754_v49 = vrot.slane %v1729_v37, %v3669_v57  ;;  %v3430_v19 = vld [vmem:[#allocation5 + $0x6a0] ss:$8 sps:$4 sm:$0xff]   ;;  %v3433_v28 = vld [vmem:[#allocation5 + $0x6b0] ss:$8 sps:$4 sm:$0xff]  }
 0x5a9   :  { %v1740_v50 = vcombine.low %v1736_v46, %v1737_v47  ;;  %v1760_v51 = vmul.f32 %v1758_v48, %v1668_v1  ;;  %v1759_v54 = vmul.f32 %v1754_v49, %v1666_v62  ;;  %v3405_v62 = vld [vmem:[#allocation5 + $0x614] ss:$8 sps:$4 sm:$0xff]   ;;  %v3403_v1 = vld [vmem:[#allocation5 + $0x610] ss:$8 sps:$4 sm:$0xff]  }
 0x5aa   :  { %2328 = vmatprep.subr.bf16.mxu0 %v3405_v62 }
 0x5ab   :  { %v1747_v55 = vrot.slane %v1740_v50, %v3663_v52  ;;  %2329 = vmatpush1.bf16.msra.mxu0 %v3403_v1 }
 0x5ac   :  { %2330 = vmatprep.subr.bf16.mxu0 %v3408_v11 }
 0x5ad   :  { %v1748_v59 = vrot.slane %v1747_v55, 7 }
 0x5af   :  { %v1750_v60 = vsub.f32 %v3006_v43, %v1748_v59  ;;  %2331 = vmatpush1.bf16.msra.mxu0 %v3406_v12 }
 0x5b0   :  { %2332 = vmatprep.subr.bf16.mxu0 %v3411_v13 }
 0x5b1   :  { %v1769_v61 = vrot.slane %v1750_v60, %v3681_v10  ;;  %v1765_v63 = vrot.slane %v1750_v60, %v3679_v8 }
 0x5b3   :  { %v1779_v0 = vrot.slane %v1769_v61, %v3679_v8  ;;  %v1775_v53 = vrot.slane %v1765_v63, %v3679_v8  ;;  %2333 = vmatpush1.bf16.msra.mxu0 %v3409_v14 }
 0x5b4   :  { %2334 = vmatprep.subr.bf16.mxu0 %v3414_v15 }
 0x5b5   :  { %v1781_v56 = vadd.f32 %v1779_v0, %v1760_v51  ;;  %v1780_v2 = vadd.f32 %v1775_v53, %v1759_v54 }
 0x5b7   :  { %v1783_v3 = vmax.f32 %v1781_v56, 0.0  ;;  %v1782_v4 = vmax.f32 %v1780_v2, 0.0  ;;  %2335 = vmatpush1.bf16.msra.mxu0 %v3412_v16 }
 0x5b8   :  { %2336 = vmatprep.subr.bf16.mxu0 %v3417_v9 }
 0x5b9   :  { %v1818_v5 = vpack.c.bf16 %v1783_v3, %v1783_v3  ;;  %v1817_v7 = vpack.c.bf16 %v1782_v4, %v1782_v4 }
 0x5bb   :  { %2011 = vmatprep.mubr.bf16.mxu1 %v1818_v5  ;;  %2337 = vmatpush1.bf16.msra.mxu0 %v3415_v6 }
 0x5bc   :  { %2012 = vmatmul.mubr.bf16.vlgmr.msra.gmra.mrb[8].mxu1 %v1817_v7  ;;  %2338 = vmatprep.subr.bf16.mxu0 %v3420_v18 }
 0x5bd   :  { %2674 = vmatpush1.bf16.msra.mxu1 %v3448_v39 }
 0x5bf   :  { %2339 = vmatpush1.bf16.msra.mxu0 %v3418_v20 }
 0x5c0   :  { %2340 = vmatprep.subr.bf16.mxu0 %v3423_v21 }
 0x5c3   :  { %2341 = vmatpush1.bf16.msra.mxu0 %v3421_v22 }
 0x5c4   :  { %2342 = vmatprep.subr.bf16.mxu0 %v3426_v23 }
 0x5c7   :  { %2343 = vmatpush1.bf16.msra.mxu0 %v3424_v24 }
 0x5c8   :  { %2344 = vmatprep.subr.bf16.mxu0 %v3429_v25  ;;  %v3039_v25 = vld [vmem:[%s3792_s2 + $0x14] sm:$0xf] }
 0x5cb   :  { %2345 = vmatpush1.bf16.msra.mxu0 %v3427_v26 }
 0x5cc   :  { %2346 = vmatprep.subr.bf16.mxu0 %v3432_v17 }
 0x5cf   :  { %2347 = vmatpush1.bf16.msra.mxu0 %v3430_v19 }
 0x5d0   :  { %2348 = vmatprep.subr.bf16.mxu0 %v3435_v27 }
 0x5d3   :  { %2349 = vmatpush1.bf16.msra.mxu0 %v3433_v28 }
 0x5d4   :  { %2350 = vmatprep.subr.bf16.mxu0 %v3438_v30 }
 0x5d7   :  { %2351 = vmatpush1.bf16.msra.mxu0 %v3436_v29 }
 0x5d8   :  { %2352 = vmatprep.subr.bf16.mxu0 %v3441_v31 }
 0x5db   :  { %2353 = vmatpush1.bf16.msra.mxu0 %v3439_v32 }
 0x5dc   :  { %2354 = vmatprep.subr.bf16.mxu0 %v3444_v33 }
 0x5df   :  { %2355 = vmatpush1.bf16.msra.mxu0 %v3442_v35 }
 0x5e0   :  { %2356 = vmatprep.subr.bf16.mxu0 %v3447_v36 }
 0x5e3   :  { %2357 = vmatpush1.bf16.msra.mxu0 %v3445_v38 }
 0x68f   :  { %v2013_v41 = vpop.f32.mrb[8].mxu1 }
 0x690   :  { %v2022_v42 = vrot.slane %v2013_v41, 4  ;;  %v2036_v43 = vmul.f32 %v2013_v41, %v2013_v41  ;;  %v2015_v44 = vpop.f32.mrb[9].mxu1 }
 0x691   :  { %v2028_v34 = vrot.slane %v2015_v44, 4  ;;  %v2037_v37 = vmul.f32 %v2015_v44, %v2015_v44  ;;  %v2017_v45 = vpop.f32.mrb[10].mxu1 }
 0x692   :  { %v2023_v46 = vadd.f32 %v2022_v42, %v2013_v41  ;;  %v2038_v47 = vrot.slane %v2036_v43, 4  ;;  %v2018_v48 = vpop.f32.mrb[11].mxu1 }
 0x693   :  { %v2029_v49 = vadd.f32 %v2028_v34, %v2015_v44  ;;  %v2044_v50 = vrot.slane %v2037_v37, 4 }
 0x694   :  { %v2024_v51 = vrot.slane %v2023_v46, 2  ;;  %v2039_v54 = vadd.f32 %v2038_v47, %v2036_v43 }
 0x695   :  { %v2030_v55 = vrot.slane %v2029_v49, 2  ;;  %v2045_v59 = vadd.f32 %v2044_v50, %v2037_v37  ;;  %v3456_v50 = vld [vmem:[#allocation5 + $0x724] ss:$8 sps:$4 sm:$0xff]  }
 0x696   :  { %v2025_v60 = vadd.f32 %v2024_v51, %v2023_v46  ;;  %v2040_v61 = vrot.slane %v2039_v54, 2  ;;  %v3454_v51 = vld [vmem:[#allocation5 + $0x720] ss:$8 sps:$4 sm:$0xff]  }
 0x697   :  { %v2031_v63 = vadd.f32 %v2030_v55, %v2029_v49  ;;  %v2046_v0 = vrot.slane %v2045_v59, 2  ;;  %v3457_v55 = vld [vmem:[#allocation5 + $0x730] ss:$8 sps:$4 sm:$0xff]  }
 0x698   :  { %v2026_v53 = vrot.slane %v2025_v60, 1  ;;  %v2041_v56 = vadd.f32 %v2040_v61, %v2039_v54  ;;  %v3459_v54 = vld [vmem:[#allocation5 + $0x734] ss:$8 sps:$4 sm:$0xff]  }
 0x699   :  { %v2032_v2 = vrot.slane %v2031_v63, 1  ;;  %v2047_v3 = vadd.f32 %v2046_v0, %v2045_v59  ;;  %v3462_v59 = vld [vmem:[#allocation5 + $0x744] ss:$8 sps:$4 sm:$0xff]   ;;  %v3465_v61 = vld [vmem:[#allocation5 + $0x754] ss:$8 sps:$4 sm:$0xff]  }
 0x69a   :  { %v2027_v4 = vadd.f32 %v2026_v53, %v2025_v60  ;;  %v2042_v5 = vrot.slane %v2041_v56, 1  ;;  %v3460_v60 = vld [vmem:[#allocation5 + $0x740] ss:$8 sps:$4 sm:$0xff]   ;;  %v3468_v0 = vld [vmem:[#allocation5 + $0x764] ss:$8 sps:$4 sm:$0xff]  }
 0x69b   :  { %v2033_v7 = vadd.f32 %v2032_v2, %v2031_v63  ;;  %v2048_v62 = vrot.slane %v2047_v3, 1  ;;  %v3463_v63 = vld [vmem:[#allocation5 + $0x750] ss:$8 sps:$4 sm:$0xff]   ;;  %v3466_v53 = vld [vmem:[#allocation5 + $0x760] ss:$8 sps:$4 sm:$0xff]  }
 0x69c   :  { %v2034_v1 = vmul.f32 0.125, %v2027_v4  ;;  %v2043_v11 = vadd.f32 %v2042_v5, %v2041_v56  ;;  %v3471_v56 = vld [vmem:[#allocation5 + $0x774] ss:$8 sps:$4 sm:$0xff]   ;;  %v3469_v2 = vld [vmem:[#allocation5 + $0x770] ss:$8 sps:$4 sm:$0xff]  }
 0x69d   :  { %v2035_v12 = vmul.f32 0.125, %v2033_v7  ;;  %v2049_v13 = vadd.f32 %v2048_v62, %v2047_v3  ;;  %v3474_v3 = vld [vmem:[#allocation5 + $0x784] ss:$8 sps:$4 sm:$0xff]   ;;  %v3472_v4 = vld [vmem:[#allocation5 + $0x780] ss:$8 sps:$4 sm:$0xff]  }
 0x69e   :  { %v2050_v14 = vmul.f32 0.125, %v2043_v11  ;;  %v2052_v15 = vmul.f32 %v2034_v1, %v2034_v1  ;;  %v3477_v5 = vld [vmem:[#allocation5 + $0x794] ss:$8 sps:$4 sm:$0xff]   ;;  %v3475_v7 = vld [vmem:[#allocation5 + $0x790] ss:$8 sps:$4 sm:$0xff]  }
 0x69f   :  { %v2051_v16 = vmul.f32 0.125, %v2049_v13  ;;  %v2053_v9 = vmul.f32 %v2035_v12, %v2035_v12  ;;  %v3480_v62 = vld [vmem:[#allocation5 + $0x7a4] ss:$8 sps:$4 sm:$0xff]   ;;  %v3483_v11 = vld [vmem:[#allocation5 + $0x7b4] ss:$8 sps:$4 sm:$0xff]  }
 0x6a0   :  { %v2054_v6 = vsub.f32 %v2050_v14, %v2052_v15  ;;  %v3484_v13 = vld [vmem:[#allocation5 + $0x7c0] ss:$8 sps:$4 sm:$0xff]   ;;  %v3486_v14 = vld [vmem:[#allocation5 + $0x7c4] ss:$8 sps:$4 sm:$0xff]   ;;  %v3489_v15 = vld [vmem:[#allocation5 + $0x7d4] ss:$8 sps:$4 sm:$0xff]  }
 0x6a1   :  { %v2055_v18 = vsub.f32 %v2051_v16, %v2053_v9  ;;  %v3487_v16 = vld [vmem:[#allocation5 + $0x7d0] ss:$8 sps:$4 sm:$0xff]   ;;  %v3492_v9 = vld [vmem:[#allocation5 + $0x7e4] ss:$8 sps:$4 sm:$0xff]  }
 0x6a2   :  { %v2056_v20 = vadd.f32 1e-05, %v2054_v6  ;;  %v3490_v6 = vld [vmem:[#allocation5 + $0x7e0] ss:$8 sps:$4 sm:$0xff]  }
 0x6a3   :  { %v2057_v21 = vadd.f32 1e-05, %v2055_v18  ;;  %v3495_v18 = vld [vmem:[#allocation5 + $0x7f4] ss:$8 sps:$4 sm:$0xff]  }
 0x6a4   :  { %3516 = vrsqrt.f32 %v2056_v20  ;;  %v3493_v20 = vld [vmem:[#allocation5 + $0x7f0] ss:$8 sps:$4 sm:$0xff]  }
 0x6a5   :  { %3518 = vrsqrt.f32 %v2057_v21 }
 0x6ae   :  { %v3517_v22 = vpop.eup %3516 }
 0x6af   :  { %v3519_v23 = vpop.eup %3518 }
 0x6b0   :  { %v2062_v24 = vcombine.low %v3517_v22, %v3519_v23 }
 0x6b2   :  { %v2069_v26 = vrot.slane %v2062_v24, %v3663_v52 }
 0x6b4   :  { %v2071_v17 = vmul.f32 %v3039_v25, %v2069_v26 }
 0x6b6   :  { %v2076_v19 = vrot.slane %v2071_v17, %v3669_v57  ;;  %v2080_v27 = vrot.slane %v2071_v17, %v3671_v58 }
 0x6b8   :  { %v2083_v28 = vmul.f32 %v2076_v19, %v2034_v1  ;;  %v2084_v29 = vmul.f32 %v2080_v27, %v2035_v12  ;;  %v2105_v30 = vrot.slane %v2080_v27, %v3669_v57  ;;  %v2101_v31 = vrot.slane %v2076_v19, %v3669_v57  ;;  %v3478_v1 = vld [vmem:[#allocation5 + $0x7a0] ss:$8 sps:$4 sm:$0xff]   ;;  %v3481_v12 = vld [vmem:[#allocation5 + $0x7b0] ss:$8 sps:$4 sm:$0xff]  }
 0x6ba   :  { %v2087_v32 = vcombine.low %v2083_v28, %v2084_v29  ;;  %v2107_v33 = vmul.f32 %v2105_v30, %v2015_v44  ;;  %v2106_v35 = vmul.f32 %v2101_v31, %v2013_v41  ;;  %v3453_v41 = vld [vmem:[#allocation5 + $0x714] ss:$8 sps:$4 sm:$0xff]   ;;  %v3451_v44 = vld [vmem:[#allocation5 + $0x710] ss:$8 sps:$4 sm:$0xff]  }
 0x6bb   :  { %2675 = vmatprep.subr.bf16.mxu1 %v3453_v41 }
 0x6bc   :  { %v2094_v36 = vrot.slane %v2087_v32, %v3663_v52  ;;  %2676 = vmatpush1.bf16.msra.mxu1 %v3451_v44 }
 0x6bd   :  { %2677 = vmatprep.subr.bf16.mxu1 %v3456_v50 }
 0x6be   :  { %v2095_v38 = vrot.slane %v2094_v36, 7 }
 0x6c0   :  { %v2097_v39 = vsub.f32 %v3039_v25, %v2095_v38  ;;  %2678 = vmatpush1.bf16.msra.mxu1 %v3454_v51 }
 0x6c1   :  { %2679 = vmatprep.subr.bf16.mxu1 %v3459_v54 }
 0x6c2   :  { %v2116_v40 = vrot.slane %v2097_v39, %v3681_v10  ;;  %v2112_v42 = vrot.slane %v2097_v39, %v3679_v8 }
 0x6c4   :  { %v2126_v43 = vrot.slane %v2116_v40, %v3679_v8  ;;  %v2122_v34 = vrot.slane %v2112_v42, %v3679_v8  ;;  %2680 = vmatpush1.bf16.msra.mxu1 %v3457_v55 }
 0x6c5   :  { %2681 = vmatprep.subr.bf16.mxu1 %v3462_v59 }
 0x6c6   :  { %v2128_v37 = vadd.f32 %v2126_v43, %v2107_v33  ;;  %v2127_v45 = vadd.f32 %v2122_v34, %v2106_v35 }
 0x6c8   :  { %v2130_v46 = vmax.f32 %v2128_v37, 0.0  ;;  %v2129_v47 = vmax.f32 %v2127_v45, 0.0  ;;  %2682 = vmatpush1.bf16.msra.mxu1 %v3460_v60 }
 0x6c9   :  { %2683 = vmatprep.subr.bf16.mxu1 %v3465_v61 }
 0x6ca   :  { %v2165_v48 = vpack.c.bf16 %v2130_v46, %v2130_v46  ;;  %v2164_v49 = vpack.c.bf16 %v2129_v47, %v2129_v47 }
 0x6cc   :  { %2358 = vmatprep.mubr.bf16.mxu0 %v2165_v48  ;;  %2684 = vmatpush1.bf16.msra.mxu1 %v3463_v63 }
 0x6cd   :  { %2359 = vmatmul.mubr.bf16.vlgmr.msra.gmra.mrb[12].mxu0 %v2164_v49  ;;  %2685 = vmatprep.subr.bf16.mxu1 %v3468_v0 }
 0x6d0   :  { %2686 = vmatpush1.bf16.msra.mxu1 %v3466_v53 }
 0x6d1   :  { %2687 = vmatprep.subr.bf16.mxu1 %v3471_v56 }
 0x6d4   :  { %2688 = vmatpush1.bf16.msra.mxu1 %v3469_v2 }
 0x6d5   :  { %2689 = vmatprep.subr.bf16.mxu1 %v3474_v3  ;;  %v3072_v3 = vld [vmem:[%s3792_s2 + $0x18] sm:$0xf] }
 0x6d8   :  { %2690 = vmatpush1.bf16.msra.mxu1 %v3472_v4 }
 0x6d9   :  { %2691 = vmatprep.subr.bf16.mxu1 %v3477_v5 }
 0x6dc   :  { %2692 = vmatpush1.bf16.msra.mxu1 %v3475_v7 }
 0x6dd   :  { %2693 = vmatprep.subr.bf16.mxu1 %v3480_v62 }
 0x6e0   :  { %2694 = vmatpush1.bf16.msra.mxu1 %v3478_v1 }
 0x6e1   :  { %2695 = vmatprep.subr.bf16.mxu1 %v3483_v11 }
 0x6e4   :  { %2696 = vmatpush1.bf16.msra.mxu1 %v3481_v12 }
 0x6e5   :  { %2697 = vmatprep.subr.bf16.mxu1 %v3486_v14 }
 0x6e8   :  { %2698 = vmatpush1.bf16.msra.mxu1 %v3484_v13 }
 0x6e9   :  { %2699 = vmatprep.subr.bf16.mxu1 %v3489_v15 }
 0x6ec   :  { %2700 = vmatpush1.bf16.msra.mxu1 %v3487_v16 }
 0x6ed   :  { %2701 = vmatprep.subr.bf16.mxu1 %v3492_v9 }
 0x6f0   :  { %2702 = vmatpush1.bf16.msra.mxu1 %v3490_v6 }
 0x6f1   :  { %2703 = vmatprep.subr.bf16.mxu1 %v3495_v18 }
 0x6f4   :  { %2704 = vmatpush1.bf16.msra.mxu1 %v3493_v20 }
 0x7a0   :  { %v2360_v21 = vpop.f32.mrb[12].mxu0 }
 0x7a1   :  { %v2369_v22 = vrot.slane %v2360_v21, 4  ;;  %v2383_v23 = vmul.f32 %v2360_v21, %v2360_v21  ;;  %v2362_v24 = vpop.f32.mrb[13].mxu0 }
 0x7a2   :  { %v2375_v25 = vrot.slane %v2362_v24, 4  ;;  %v2384_v26 = vmul.f32 %v2362_v24, %v2362_v24  ;;  %v2364_v17 = vpop.f32.mrb[14].mxu0 }
 0x7a3   :  { %v2370_v19 = vadd.f32 %v2369_v22, %v2360_v21  ;;  %v2385_v27 = vrot.slane %v2383_v23, 4  ;;  %v2365_v28 = vpop.f32.mrb[15].mxu0 }
 0x7a4   :  { %v2376_v29 = vadd.f32 %v2375_v25, %v2362_v24  ;;  %v2391_v30 = vrot.slane %v2384_v26, 4 }
 0x7a5   :  { %v2371_v31 = vrot.slane %v2370_v19, 2  ;;  %v2386_v32 = vadd.f32 %v2385_v27, %v2383_v23 }
 0x7a6   :  { %v2377_v33 = vrot.slane %v2376_v29, 2  ;;  %v2392_v35 = vadd.f32 %v2391_v30, %v2384_v26 }
 0x7a7   :  { %v2372_v36 = vadd.f32 %v2371_v31, %v2370_v19  ;;  %v2387_v38 = vrot.slane %v2386_v32, 2 }
 0x7a8   :  { %v2378_v39 = vadd.f32 %v2377_v33, %v2376_v29  ;;  %v2393_v40 = vrot.slane %v2392_v35, 2 }
 0x7a9   :  { %v2373_v42 = vrot.slane %v2372_v36, 1  ;;  %v2388_v43 = vadd.f32 %v2387_v38, %v2386_v32 }
 0x7aa   :  { %v2379_v34 = vrot.slane %v2378_v39, 1  ;;  %v2394_v37 = vadd.f32 %v2393_v40, %v2392_v35 }
 0x7ab   :  { %v2374_v45 = vadd.f32 %v2373_v42, %v2372_v36  ;;  %v2389_v46 = vrot.slane %v2388_v43, 1 }
 0x7ac   :  { %v2380_v47 = vadd.f32 %v2379_v34, %v2378_v39  ;;  %v2395_v48 = vrot.slane %v2394_v37, 1 }
 0x7ad   :  { %v2381_v49 = vmul.f32 0.125, %v2374_v45  ;;  %v2390_v41 = vadd.f32 %v2389_v46, %v2388_v43 }
 0x7ae   :  { %v2382_v44 = vmul.f32 0.125, %v2380_v47  ;;  %v2396_v50 = vadd.f32 %v2395_v48, %v2394_v37 }
 0x7af   :  { %v2397_v51 = vmul.f32 0.125, %v2390_v41  ;;  %v2399_v54 = vmul.f32 %v2381_v49, %v2381_v49 }
 0x7b0   :  { %v2398_v55 = vmul.f32 0.125, %v2396_v50  ;;  %v2400_v59 = vmul.f32 %v2382_v44, %v2382_v44 }
 0x7b1   :  { %v2401_v60 = vsub.f32 %v2397_v51, %v2399_v54 }
 0x7b2   :  { %v2402_v61 = vsub.f32 %v2398_v55, %v2400_v59 }
 0x7b3   :  { %v2403_v63 = vadd.f32 1e-05, %v2401_v60 }
 0x7b4   :  { %v2404_v0 = vadd.f32 1e-05, %v2402_v61 }
 0x7b5   :  { %3520 = vrsqrt.f32 %v2403_v63 }
 0x7b6   :  { %3522 = vrsqrt.f32 %v2404_v0 }
 0x7bf   :  { %v3521_v53 = vpop.eup %3520 }
 0x7c0   :  { %v3523_v56 = vpop.eup %3522 }
 0x7c1   :  { %v2409_v2 = vcombine.low %v3521_v53, %v3523_v56 }
 0x7c3   :  { %v2416_v4 = vrot.slane %v2409_v2, %v3663_v52 }
 0x7c5   :  { %v2418_v5 = vmul.f32 %v3072_v3, %v2416_v4 }
 0x7c7   :  { %v2423_v7 = vrot.slane %v2418_v5, %v3669_v57  ;;  %v2427_v62 = vrot.slane %v2418_v5, %v3671_v58 }
 0x7c9   :  { %v2430_v1 = vmul.f32 %v2423_v7, %v2381_v49  ;;  %v2431_v11 = vmul.f32 %v2427_v62, %v2382_v44  ;;  %v2452_v12 = vrot.slane %v2427_v62, %v3669_v57  ;;  %v2448_v13 = vrot.slane %v2423_v7, %v3669_v57 }
 0x7cb   :  { %v2434_v14 = vcombine.low %v2430_v1, %v2431_v11  ;;  %v2454_v15 = vmul.f32 %v2452_v12, %v2362_v24  ;;  %v2453_v16 = vmul.f32 %v2448_v13, %v2360_v21 }
 0x7cd   :  { %v2441_v9 = vrot.slane %v2434_v14, %v3663_v52  ;;  %v3105_v14 = vld [vmem:[%s3792_s2 + $0x1c] sm:$0xf]  ;;  %s3605_s2 = smov [#allocation7]  }
 0x7ce   :  { %s2833_s25 = sshll.u32 %s3605_s2, 4  ;;  %s2834_s25 = int_to_ptr.vmem [resolvable:$true] %s2833_s25 }
 0x7cf   :  { %v2442_v6 = vrot.slane %v2441_v9, 7  ;;  %s3572_s26 = scalar_lea.vmem %s2834_s25, 256  ;;  %p3577_p3 = scmp.lt.s32.totalorder %s2834_s25, %s2834_s25 }
 0x7d0   :  { %p3573_p2 = scmp.ne.s32.totalorder %s2834_s25, %s3572_s26  ;;  %p3578_p4 = scmp.lt.s32.totalorder %s3572_s26, %s3572_s26 }
 0x7d1   :  { %v2444_v18 = vsub.f32 %v3072_v3, %v2442_v6 }
 0x7d2   :  { %p3579_p5 = por %p3578_p4, %p3577_p3 }
 0x7d3   :  { %v2463_v20 = vrot.slane %v2444_v18, %v3681_v10  ;;  %v2459_v22 = vrot.slane %v2444_v18, %v3679_v8 }
 0x7d4   :  { %p3580_p6 = pnand %p3579_p5, %p3573_p2 }
 0x7d5   :  { %v2473_v23 = vrot.slane %v2463_v20, %v3679_v8  ;;  %v2469_v25 = vrot.slane %v2459_v22, %v3679_v8 }
 0x7d7   :  { %v2475_v26 = vadd.f32 %v2473_v23, %v2454_v15  ;;  %v2474_v17 = vadd.f32 %v2469_v25, %v2453_v16 }
 0x7d9   :  { %v2477_v19 = vmax.f32 %v2475_v26, 0.0  ;;  %v2476_v27 = vmax.f32 %v2474_v17, 0.0 }
 0x7db   :  { %v2512_v28 = vpack.c.bf16 %v2477_v19, %v2477_v19  ;;  %v2511_v29 = vpack.c.bf16 %v2476_v27, %v2476_v27 }
 0x7dd   :  { %2705 = vmatprep.mubr.bf16.mxu1 %v2512_v28 }
 0x7de   :  { %2706 = vmatmul.mubr.bf16.vlgmr.msra.gmra.mrb[12].mxu1 %v2511_v29 }
 0x8b1   :  { %v2707_v21 = vpop.f32.mrb[12].mxu1 }
 0x8b2   :  { %v2716_v24 = vrot.slane %v2707_v21, 4  ;;  %v2730_v30 = vmul.f32 %v2707_v21, %v2707_v21  ;;  %v2709_v31 = vpop.f32.mrb[13].mxu1 }
 0x8b3   :  { %v2722_v32 = vrot.slane %v2709_v31, 4  ;;  %v2731_v33 = vmul.f32 %v2709_v31, %v2709_v31  ;;  %v2711_v35 = vpop.f32.mrb[14].mxu1 }
 0x8b4   :  { %v2717_v36 = vadd.f32 %v2716_v24, %v2707_v21  ;;  %v2732_v38 = vrot.slane %v2730_v30, 4  ;;  %v2712_v39 = vpop.f32.mrb[15].mxu1 }
 0x8b5   :  { %v2723_v40 = vadd.f32 %v2722_v32, %v2709_v31  ;;  %v2738_v42 = vrot.slane %v2731_v33, 4 }
 0x8b6   :  { %v2718_v43 = vrot.slane %v2717_v36, 2  ;;  %v2733_v34 = vadd.f32 %v2732_v38, %v2730_v30 }
 0x8b7   :  { %v2724_v37 = vrot.slane %v2723_v40, 2  ;;  %v2739_v45 = vadd.f32 %v2738_v42, %v2731_v33 }
 0x8b8   :  { %v2719_v46 = vadd.f32 %v2718_v43, %v2717_v36  ;;  %v2734_v47 = vrot.slane %v2733_v34, 2 }
 0x8b9   :  { %v2725_v48 = vadd.f32 %v2724_v37, %v2723_v40  ;;  %v2740_v49 = vrot.slane %v2739_v45, 2 }
 0x8ba   :  { %v2720_v41 = vrot.slane %v2719_v46, 1  ;;  %v2735_v44 = vadd.f32 %v2734_v47, %v2733_v34 }
 0x8bb   :  { %v2726_v50 = vrot.slane %v2725_v48, 1  ;;  %v2741_v51 = vadd.f32 %v2740_v49, %v2739_v45 }
 0x8bc   :  { %v2721_v54 = vadd.f32 %v2720_v41, %v2719_v46  ;;  %v2736_v55 = vrot.slane %v2735_v44, 1 }
 0x8bd   :  { %v2727_v59 = vadd.f32 %v2726_v50, %v2725_v48  ;;  %v2742_v60 = vrot.slane %v2741_v51, 1 }
 0x8be   :  { %v2728_v61 = vmul.f32 0.125, %v2721_v54  ;;  %v2737_v63 = vadd.f32 %v2736_v55, %v2735_v44 }
 0x8bf   :  { %v2729_v0 = vmul.f32 0.125, %v2727_v59  ;;  %v2743_v53 = vadd.f32 %v2742_v60, %v2741_v51 }
 0x8c0   :  { %v2744_v56 = vmul.f32 0.125, %v2737_v63  ;;  %v2746_v2 = vmul.f32 %v2728_v61, %v2728_v61 }
 0x8c1   :  { %v2745_v3 = vmul.f32 0.125, %v2743_v53  ;;  %v2747_v4 = vmul.f32 %v2729_v0, %v2729_v0 }
 0x8c2   :  { %v2748_v5 = vsub.f32 %v2744_v56, %v2746_v2 }
 0x8c3   :  { %v2749_v7 = vsub.f32 %v2745_v3, %v2747_v4 }
 0x8c4   :  { %v2750_v62 = vadd.f32 1e-05, %v2748_v5 }
 0x8c5   :  { %v2751_v1 = vadd.f32 1e-05, %v2749_v7 }
 0x8c6   :  { %3524 = vrsqrt.f32 %v2750_v62 }
 0x8c7   :  { %3526 = vrsqrt.f32 %v2751_v1 }
 0x8d0   :  { %v3525_v11 = vpop.eup %3524 }
 0x8d1   :  { %v3527_v12 = vpop.eup %3526 }
 0x8d2   :  { %v2756_v13 = vcombine.low %v3525_v11, %v3527_v12 }
 0x8d4   :  { %v2763_v15 = vrot.slane %v2756_v13, %v3663_v52 }
 0x8d6   :  { %v2765_v16 = vmul.f32 %v3105_v14, %v2763_v15 }
 0x8d8   :  { %v2770_v9 = vrot.slane %v2765_v16, %v3669_v57  ;;  %v2774_v6 = vrot.slane %v2765_v16, %v3671_v58 }
 0x8da   :  { %v2777_v18 = vmul.f32 %v2770_v9, %v2728_v61  ;;  %v2778_v20 = vmul.f32 %v2774_v6, %v2729_v0  ;;  %v2795_v22 = vrot.slane %v2770_v9, %v3669_v57  ;;  %v2799_v23 = vrot.slane %v2774_v6, %v3669_v57 }
 0x8dc   :  { %v2781_v25 = vcombine.low %v2777_v18, %v2778_v20  ;;  %v2801_v26 = vmul.f32 %v2799_v23, %v2709_v31  ;;  %v2800_v17 = vmul.f32 %v2795_v22, %v2707_v21 }
 0x8de   :  { %v2788_v19 = vrot.slane %v2781_v25, %v3663_v52 }
 0x8e0   :  { %v2789_v27 = vrot.slane %v2788_v19, 7 }
 0x8e2   :  { %v2791_v28 = vsub.f32 %v3105_v14, %v2789_v27 }
 0x8e4   :  { %v2806_v29 = vrot.slane %v2791_v28, %v3679_v8  ;;  %v2810_v24 = vrot.slane %v2791_v28, %v3681_v10 }
 0x8e6   :  { %v2820_v30 = vrot.slane %v2810_v24, %v3679_v8  ;;  %v2816_v58 = vrot.slane %v2806_v29, %v3679_v8 }
 0x8e8   :  { %v2822_v32 = vadd.f32 %v2820_v30, %v2801_v26  ;;  %v2821_v33 = vadd.f32 %v2816_v58, %v2800_v17 }
 0x8ea   :  { %v2824_v57 = vmax.f32 %v2822_v32, 0.0  ;;  %v2823_v35 = vmax.f32 %v2821_v33, 0.0 }
 0x8ec   :  { %2826 = vst [vmem:[#allocation7 + $0x8] sm:$0xff] %v2824_v57  ;;  %2825 = vst [vmem:[#allocation7] sm:$0xff] %v2823_v35 }
 0x8ed   :  { %3583 = shalt.err (!%p3580_p6)
}
 0x8ee   :  { %s3584_s29 = scalar_lea.hbm %s3793_s3, 256 }
 0x8ef   :  { %p3585_p7 = scmp.ne.s32.totalorder %s3793_s3, %s3584_s29  ;;  %p3588_p8 = scmp.lt.u32.totalorder %s3584_s29, %s3793_s3 }
 0x8f1   :  { %p3590_p9 = pnand %p3588_p8, %p3585_p7 }
 0x8f3   :  { %3593 = shalt.err (!%p3590_p9)
}
 0x8f4   :  { %2836 = dma.vmem_to_hbm [thread:$0]  %s2834_s25, 256, %s3793_s3, [#allocation4]  }
 0x8f5   :  { %3598 = dma.done.wait [#allocation4], 256  }
 0x8f6   :  { %3599 = vsyncadd [#allocation4], 4294967040 }
 0x8f7   :  { %2840 = vsyncpa [#allocation3], 1 }
 0x8f8   :  { %2841 = vsyncpa [#allocation6], 1 }
 0x8f9   :  { %2842 = vsyncpa [#allocation4], 1 }

</bundles_post_ra>
